<compile_context>
chip_gen: v6e
topology: v6e:2x2x1
jax: 0.10.0
libtpu: 0.0.40
codegen_flags: <defaults>
</compile_context>

<pallas_src>
import functools
import math

import jax
import jax.numpy as jnp
from jax.experimental import pallas as pl
from jax.experimental.pallas import tpu as pltpu

# ----------------------------- model config (small, consistent with the module) ----------------
HIDDEN = 32          # bert.config.hidden_size
HEADS = 4
HEAD_DIM = HIDDEN // HEADS
INTER = 64           # intermediate_size
LAYERS = 2           # encoder layers == adapter_num (adapters on every layer)
ADAPTER = 16         # adapter bottleneck_size
VOCAB = 100
MAX_POS = 64
LN_EPS = 1e-12
B, S = 2, 8
LANES = 128

# ----------------------------- packed per-layer WEIGHT slab layout -----------------------------
# Each pre-transposed (Din, Dout) matrix occupies `Din` contiguous sublane rows of a
# 128-lane bf16 slab (zero-padded lanes); offsets are kept multiples of 16 (bf16 tile).
_W_LAYOUT = {}
_row = 0
for _name, (_din, _dout) in [
        ("wqkv", (HIDDEN, 3 * HIDDEN)), ("wad", (HIDDEN, HIDDEN)),
        ("wa1", (HIDDEN, ADAPTER)),     ("wa2", (ADAPTER, HIDDEN)),
        ("wi",  (HIDDEN, INTER)),       ("wo",  (INTER, HIDDEN)),
        ("wf1", (HIDDEN, ADAPTER)),     ("wf2", (ADAPTER, HIDDEN))]:
    _W_LAYOUT[_name] = (_row, _din, _dout)
    _row += -(-_din // 16) * 16
W_ROWS = -(-_row // 16) * 16            # 256 rows x 128 lanes (bf16) per layer

# ----------------------------- packed per-layer bias/LN vector slab ----------------------------
# One segment per sublane row, zero-padded to 128 lanes -> aligned, zero-cost views.
_V_NAMES = ["qkv_b", "ad_b", "aa1_b", "aa2_b", "aln_g", "aln_b",
            "i_b", "o_b", "af1_b", "af2_b", "oln_g", "oln_b"]
_V_IDX = {n: i for i, n in enumerate(_V_NAMES)}
_V_WIDTH = {"qkv_b": 3 * HIDDEN, "ad_b": HIDDEN, "aa1_b": ADAPTER, "aa2_b": HIDDEN,
            "aln_g": HIDDEN, "aln_b": HIDDEN, "i_b": INTER, "o_b": HIDDEN,
            "af1_b": ADAPTER, "af2_b": HIDDEN, "oln_g": HIDDEN, "oln_b": HIDDEN}
V_ROWS = 16                              # 12 used rows, padded to a sublane multiple


# ----------------------------- in-kernel helpers ------------------------------------------------
def _gelu_exact(x):
    # matches torch.nn.GELU() (erf-based, exact)
    return 0.5 * x * (1.0 + jax.lax.erf(x * (1.0 / math.sqrt(2.0))))


def _mm(x, w):
    # bf16 MXU operands, f32 accumulation (weights are already stored as bf16)
    return jnp.dot(x.astype(jnp.bfloat16), w.astype(jnp.bfloat16),
                   preferred_element_type=jnp.float32)


# ----------------------------- fused encoder kernel --------------------------------------------
def fused_encoder_kernel(emb_ref, maskb_ref, embln_ref, vec_ref, w_ref,
                         o_ref, x_ref, ctx_ref, *, eps):
    """grid = (LAYERS,). Hidden state is a flattened (B*S, H) f32 slab carried in the
    VMEM scratch x_ref across layers; output HBM block is written once, at the last layer."""
    layer = pl.program_id(0)
    nbatch, seq = maskb_ref.shape                    # static ints

    def seg(name):                                   # (1, width) aligned bias/LN row
        r = _V_IDX[name]
        return vec_ref[r:r + 1, :_V_WIDTH[name]]

    def w(name):                                     # (Din, Dout) bf16 weight view
        off, din, dout = _W_LAYOUT[name]
        return w_ref[off:off + din, :dout]

    def ln(z, g, b):
        mean = jnp.mean(z, axis=-1, keepdims=True)
        var = jnp.mean((z - mean) ** 2, axis=-1, keepdims=True)
        return (z - mean) * jax.lax.rsqrt(var + eps) * g + b

    @pl.when(layer == 0)
    def _():
        # embeddings LayerNorm (embedding dropout == identity, eval semantics)
        x_ref[...] = ln(emb_ref[...], embln_ref[0:1, :], embln_ref[1:2, :])

    x = x_ref[...]                                   # (B*S, H) carried hidden slab (f32)

    # --- BertSelfAttention: fused QKV projection (1/sqrt(d) pre-folded into Q) ---
    qkv = _mm(x, w("wqkv")) + seg("qkv_b")           # (B*S, 3H)

    # per-(batch, head) softmax attention; contexts written to VMEM scratch (no lane concat)
    for b in range(nbatch):
        bias = maskb_ref[b:b + 1, :]                 # (1, S) additive mask bias
        r0, r1 = b * seq, (b + 1) * seq
        for h in range(HEADS):
            c0 = h * HEAD_DIM
            qh = qkv[r0:r1, c0:c0 + HEAD_DIM]
            kh = qkv[r0:r1, HIDDEN + c0:HIDDEN + c0 + HEAD_DIM]
            vh = qkv[r0:r1, 2 * HIDDEN + c0:2 * HIDDEN + c0 + HEAD_DIM]
            s = jax.lax.dot_general(
                qh.astype(jnp.bfloat16), kh.astype(jnp.bfloat16),
                (((1,), (1,)), ((), ())),
                preferred_element_type=jnp.float32)                    # (S, S), scale folded
            s = s + bias
            s = s - jnp.max(s, axis=-1, keepdims=True)
            p = jnp.exp(s)
            p = p * pl.reciprocal(jnp.sum(p, axis=-1, keepdims=True), approx=True)
            ctx_ref[r0:r1, c0:c0 + HEAD_DIM] = _mm(p, vh)              # (S, head_dim)

    ctx = ctx_ref[...]                               # (B*S, H)

    # --- attention.output = AdapterBertOutput(dense H->H, adapter, LN(+x)) ---
    # TODO(synk): dropout omitted (stochastic; treated as inference-mode identity)
    hd = _mm(ctx, w("wad")) + seg("ad_b")
    a = _gelu_exact(_mm(hd, w("wa1")) + seg("aa1_b"))
    a = _mm(a, w("wa2")) + seg("aa2_b") + hd                           # adapter residual
    attn_out = ln(a + x, seg("aln_g"), seg("aln_b"))

    # --- BertIntermediate (dense H->I + GELU) ---
    inter = _gelu_exact(_mm(attn_out, w("wi")) + seg("i_b"))

    # --- layer.output = AdapterBertOutput(dense I->H, adapter, LN(+attn_out)) ---
    hd2 = _mm(inter, w("wo")) + seg("o_b")
    a2 = _gelu_exact(_mm(hd2, w("wf1")) + seg("af1_b"))
    a2 = _mm(a2, w("wf2")) + seg("af2_b") + hd2                        # adapter residual
    x_new = ln(a2 + attn_out, seg("oln_g"), seg("oln_b"))

    x_ref[...] = x_new                               # carry to next layer

    @pl.when(layer == pl.num_programs(0) - 1)
    def _():
        o_ref[...] = x_new.astype(o_ref.dtype)       # write-once HBM store


# ----------------------------- deterministic parameter init ------------------------------------
def init_params(key):
    """PyTorch-layout parameters (nn.Linear: (out_features, in_features))."""
    keys = iter(jax.random.split(key, 256))

    def nrm(shape, std=0.02):
        return jax.random.normal(next(keys), shape, jnp.float32) * std

    p = {
        "word_emb": nrm((VOCAB, HIDDEN)),
        "pos_emb": nrm((MAX_POS, HIDDEN)),
        "type_emb": nrm((2, HIDDEN)),
        "emb_ln_g": jnp.ones((HIDDEN,), jnp.float32),
        "emb_ln_b": jnp.zeros((HIDDEN,), jnp.float32),
        "pooler_w": nrm((HIDDEN, HIDDEN)),
        "pooler_b": jnp.zeros((HIDDEN,), jnp.float32),
        "layers": [],
    }
    for _ in range(LAYERS):
        L = {}
        for name, (dout, din) in [("q", (HIDDEN, HIDDEN)), ("k", (HIDDEN, HIDDEN)),
                                  ("v", (HIDDEN, HIDDEN)), ("attn_dense", (HIDDEN, HIDDEN)),
                                  ("inter", (INTER, HIDDEN)), ("out_dense", (HIDDEN, INTER))]:
            L[name + "_w"] = nrm((dout, din))
            L[name + "_b"] = jnp.zeros((dout,), jnp.float32)
        for tag in ("attn_ln", "out_ln"):
            L[tag + "_g"] = jnp.ones((HIDDEN,), jnp.float32)
            L[tag + "_b"] = jnp.zeros((HIDDEN,), jnp.float32)
        # Adapter.reset_parameters: normal(std=0.001) for projections, zeros for biases
        for tag in ("adp_attn", "adp_ffn"):
            L[tag + "_w1"] = nrm((ADAPTER, HIDDEN), std=0.001)   # down proj
            L[tag + "_b1"] = jnp.zeros((ADAPTER,), jnp.float32)
            L[tag + "_w2"] = nrm((HIDDEN, ADAPTER), std=0.001)   # up proj
            L[tag + "_b2"] = jnp.zeros((HIDDEN,), jnp.float32)
        p["layers"].append(L)
    return p


def pack_params(p):
    """Pre-transpose to (Din, Dout), pack QKV (scale folded into Q), place everything into
    one lane-dense bf16 weight slab + one f32 bias/LN slab per layer, stacked over layers."""
    scale = 1.0 / math.sqrt(HEAD_DIM)
    wslabs, vslabs = [], []
    for L in p["layers"]:
        mats = {
            "wqkv": jnp.concatenate([L["q_w"] * scale, L["k_w"], L["v_w"]], axis=0).T,
            "wad": L["attn_dense_w"].T,
            "wa1": L["adp_attn_w1"].T, "wa2": L["adp_attn_w2"].T,
            "wi": L["inter_w"].T, "wo": L["out_dense_w"].T,
            "wf1": L["adp_ffn_w1"].T, "wf2": L["adp_ffn_w2"].T,
        }
        wslab = jnp.zeros((W_ROWS, LANES), jnp.float32)
        for name, mat in mats.items():
            off, din, dout = _W_LAYOUT[name]
            wslab = wslab.at[off:off + din, :dout].set(mat)
        wslabs.append(wslab.astype(jnp.bfloat16))

        vecs = {
            "qkv_b": jnp.concatenate([L["q_b"] * scale, L["k_b"], L["v_b"]]),
            "ad_b": L["attn_dense_b"],
            "aa1_b": L["adp_attn_b1"], "aa2_b": L["adp_attn_b2"],
            "aln_g": L["attn_ln_g"], "aln_b": L["attn_ln_b"],
            "i_b": L["inter_b"], "o_b": L["out_dense_b"],
            "af1_b": L["adp_ffn_b1"], "af2_b": L["adp_ffn_b2"],
            "oln_g": L["out_ln_g"], "oln_b": L["out_ln_b"],
        }
        vslab = jnp.zeros((V_ROWS, LANES), jnp.float32)
        for name, v in vecs.items():
            vslab = vslab.at[_V_IDX[name], :v.shape[0]].set(v)
        vslabs.append(vslab)

    return {
        "word_emb": p["word_emb"], "pos_emb": p["pos_emb"], "type_emb": p["type_emb"],
        "embln": jnp.stack([p["emb_ln_g"], p["emb_ln_b"]]),            # (2, H)
        "pooler_w": p["pooler_w"], "pooler_b": p["pooler_b"],
        "wslab": jnp.stack(wslabs),                                    # (L, 256, 128) bf16
        "vec": jnp.stack(vslabs),                                      # (L, 16, 128) f32
    }


# ----------------------------- full forward (AdapterBertModel.forward == bert forward) ---------
def adapter_bert_forward(params, input_ids, mask):
    Bsz, Seq = input_ids.shape
    positions = jnp.arange(Seq)
    emb = (params["word_emb"][input_ids]
           + params["pos_emb"][positions][None, :, :]
           + params["type_emb"][0][None, None, :])                    # token_type_ids = 0
    emb_flat = emb.reshape(Bsz * Seq, HIDDEN)
    mask_bias = (1.0 - mask.astype(jnp.float32)) * -10000.0           # (B, S) additive bias
    BS = Bsz * Seq

    flat_out = pl.pallas_call(
        functools.partial(fused_encoder_kernel, eps=LN_EPS),
        out_shape=jax.ShapeDtypeStruct((BS, HIDDEN), jnp.float32),
        grid=(LAYERS,),
        in_specs=[
            pl.BlockSpec((BS, HIDDEN), lambda l: (0, 0)),             # embeddings (resident)
            pl.BlockSpec((Bsz, Seq), lambda l: (0, 0)),               # mask bias (resident)
            pl.BlockSpec((2, HIDDEN), lambda l: (0, 0)),              # embedding LN gamma/beta
            pl.BlockSpec((None, V_ROWS, LANES), lambda l: (l, 0, 0)),  # per-layer bias/LN slab
            pl.BlockSpec((None, W_ROWS, LANES), lambda l: (l, 0, 0)),  # per-layer weight slab
        ],
        out_specs=pl.BlockSpec((BS, HIDDEN), lambda l: (0, 0)),       # written once (last layer)
        scratch_shapes=[pltpu.VMEM((BS, HIDDEN), jnp.float32),        # carried hidden slab
                        pltpu.VMEM((BS, HIDDEN), jnp.float32)],       # attention context slab
        compiler_params=pltpu.CompilerParams(
            dimension_semantics=("arbitrary",)),
    )(emb_flat, mask_bias, params["embln"], params["vec"], params["wslab"])

    seq_out = flat_out.reshape(Bsz, Seq, HIDDEN)
    # Pooler: tiny (B, H) x (H, H) tanh dense — plain XLA (not worth a kernel launch).
    pooled = jnp.tanh(seq_out[:, 0, :] @ params["pooler_w"].T + params["pooler_b"])
    return seq_out, pooled


# ----------------------------- main -------------------------------------------------------------
if __name__ == "__main__":
    key = jax.random.PRNGKey(0)
    pkey, ikey = jax.random.split(key)
    params = pack_params(init_params(pkey))

    input_ids = jax.random.randint(ikey, (B, S), 0, VOCAB, dtype=jnp.int32)
    mask = jnp.ones((B, S), dtype=jnp.int32)

    fwd = jax.jit(adapter_bert_forward)
    seq_out, pooled = fwd(params, input_ids, mask)
    jax.block_until_ready((seq_out, pooled))

    assert seq_out.shape == (B, S, HIDDEN) and pooled.shape == (B, HIDDEN)
    assert bool(jnp.all(jnp.isfinite(seq_out))) and bool(jnp.all(jnp.isfinite(pooled)))
    print("KERNEL_OK")
</pallas_src>

<mosaic_0001>
module attributes {stable_mosaic.version = 11 : i64} {
  func.func @fused_encoder_kernel(%arg0: i32, %arg1: memref<16x32xf32, #tpu.memory_space<vmem>>, %arg2: memref<2x8xf32, #tpu.memory_space<vmem>>, %arg3: memref<2x32xf32, #tpu.memory_space<vmem>>, %arg4: memref<1x16x128xf32, #tpu.memory_space<vmem>>, %arg5: memref<1x256x128xbf16, #tpu.memory_space<vmem>>, %arg6: memref<16x32xf32, #tpu.memory_space<vmem>>, %arg7: memref<16x32xf32, #tpu.memory_space<vmem>>, %arg8: memref<16x32xf32, #tpu.memory_space<vmem>>) attributes {dimension_semantics = [#tpu.dimension_semantics<arbitrary>], iteration_bounds = array<i64: 2>, scalar_prefetch = 0 : i64, scratch_operands = 2 : i64, tpu.core_type = #tpu.core_type<tc>, window_params = [{pipeline_mode = #tpu.pipeline_mode<synchronous>, transform_indices = @transform_0, window_bounds = array<i64: 16, 32>}, {pipeline_mode = #tpu.pipeline_mode<synchronous>, transform_indices = @transform_1, window_bounds = array<i64: 2, 8>}, {pipeline_mode = #tpu.pipeline_mode<synchronous>, transform_indices = @transform_2, window_bounds = array<i64: 2, 32>}, {transform_indices = @transform_3, window_bounds = array<i64: 1, 16, 128>}, {transform_indices = @transform_4, window_bounds = array<i64: 1, 256, 128>}, {pipeline_mode = #tpu.pipeline_mode<synchronous>, transform_indices = @transform_5, window_bounds = array<i64: 16, 32>}]} {
    %c0_i32 = arith.constant 0 : i32
    %0 = arith.cmpi eq, %arg0, %c0_i32 : i32
    %1 = arith.extui %0 : i1 to i32
    %c0_i32_0 = arith.constant 0 : i32
    %2 = arith.cmpi ne, %1, %c0_i32_0 : i32
    scf.if %2 {
      %c0_125 = arith.constant 0 : index
      %c0_126 = arith.constant 0 : index
      %331 = vector.load %arg1[%c0_125, %c0_126] : memref<16x32xf32, #tpu.memory_space<vmem>>, vector<16x32xf32>
      %c0_127 = arith.constant 0 : index
      %c0_128 = arith.constant 0 : index
      %332 = vector.load %arg3[%c0_127, %c0_128] : memref<2x32xf32, #tpu.memory_space<vmem>>, vector<1x32xf32>
      %c1_129 = arith.constant 1 : index
      %c0_130 = arith.constant 0 : index
      %333 = vector.load %arg3[%c1_129, %c0_130] : memref<2x32xf32, #tpu.memory_space<vmem>>, vector<1x32xf32>
      %cst_131 = arith.constant dense<0.000000e+00> : vector<16xf32>
      %334 = vector.multi_reduction <add>, %331, %cst_131 [1] : vector<16x32xf32> to vector<16xf32>
      %335 = vector.shape_cast %334 : vector<16xf32> to vector<16x1xf32>
      %cst_132 = arith.constant 3.200000e+01 : f32
      %336 = vector.broadcast %cst_132 : f32 to vector<16x1xf32>
      %337 = arith.divf %335, %336 : vector<16x1xf32>
      %338 = vector.broadcast %337 : vector<16x1xf32> to vector<16x32xf32>
      %339 = arith.subf %331, %338 : vector<16x32xf32>
      %340 = arith.mulf %339, %339 : vector<16x32xf32>
      %cst_133 = arith.constant dense<0.000000e+00> : vector<16xf32>
      %341 = vector.multi_reduction <add>, %340, %cst_133 [1] : vector<16x32xf32> to vector<16xf32>
      %342 = vector.shape_cast %341 : vector<16xf32> to vector<16x1xf32>
      %cst_134 = arith.constant 3.200000e+01 : f32
      %343 = vector.broadcast %cst_134 : f32 to vector<16x1xf32>
      %344 = arith.divf %342, %343 : vector<16x1xf32>
      %345 = vector.broadcast %337 : vector<16x1xf32> to vector<16x32xf32>
      %346 = arith.subf %331, %345 : vector<16x32xf32>
      %cst_135 = arith.constant 9.99999996E-13 : f32
      %347 = vector.broadcast %cst_135 : f32 to vector<16x1xf32>
      %348 = arith.addf %344, %347 : vector<16x1xf32>
      %349 = math.rsqrt %348 : vector<16x1xf32>
      %350 = vector.broadcast %349 : vector<16x1xf32> to vector<16x32xf32>
      %351 = arith.mulf %346, %350 : vector<16x32xf32>
      %352 = vector.broadcast %332 : vector<1x32xf32> to vector<16x32xf32>
      %353 = arith.mulf %351, %352 : vector<16x32xf32>
      %354 = vector.broadcast %333 : vector<1x32xf32> to vector<16x32xf32>
      %355 = arith.addf %353, %354 : vector<16x32xf32>
      %c0_136 = arith.constant 0 : index
      %c0_137 = arith.constant 0 : index
      %356 = vector.load %arg7[%c0_136, %c0_137] : memref<16x32xf32, #tpu.memory_space<vmem>>, vector<16x32xf32>
      tpu.vector_store %arg7[%c0_136, %c0_137], %355 {strides = array<i32>} : memref<16x32xf32, #tpu.memory_space<vmem>>, vector<16x32xf32>,
    } else {
    }
    %c0 = arith.constant 0 : index
    %c0_1 = arith.constant 0 : index
    %3 = vector.load %arg7[%c0, %c0_1] : memref<16x32xf32, #tpu.memory_space<vmem>>, vector<16x32xf32>
    %c0_2 = arith.constant 0 : index
    %c0_3 = arith.constant 0 : index
    %c0_4 = arith.constant 0 : index
    %4 = vector.load %arg5[%c0_2, %c0_3, %c0_4] : memref<1x256x128xbf16, #tpu.memory_space<vmem>>, vector<1x32x96xbf16>
    %5 = vector.shape_cast %4 : vector<1x32x96xbf16> to vector<32x96xbf16>
    %6 = arith.truncf %3 : vector<16x32xf32> to vector<16x32xbf16>
    %cst = arith.constant dense<0.000000e+00> : vector<16x96xf32>
    %7 = tpu.matmul %6, %5, %cst {dimension_numbers = #tpu.dot_dimension_numbers<[1], [0], [0], [1], [0, 0, 1, 1], [], []>} : vector<16x32xbf16>, vector<32x96xbf16>, vector<16x96xf32> -> vector<16x96xf32>
    %c0_5 = arith.constant 0 : index
    %c0_6 = arith.constant 0 : index
    %c0_7 = arith.constant 0 : index
    %8 = vector.load %arg4[%c0_5, %c0_6, %c0_7] : memref<1x16x128xf32, #tpu.memory_space<vmem>>, vector<1x1x96xf32>
    %9 = vector.shape_cast %8 : vector<1x1x96xf32> to vector<1x96xf32>
    %10 = vector.broadcast %9 : vector<1x96xf32> to vector<16x96xf32>
    %11 = arith.addf %7, %10 : vector<16x96xf32>
    %c0_8 = arith.constant 0 : index
    %c0_9 = arith.constant 0 : index
    %12 = vector.load %arg2[%c0_8, %c0_9] : memref<2x8xf32, #tpu.memory_space<vmem>>, vector<1x8xf32>
    %13 = vector.extract_strided_slice %11 {offsets = [0, 0], sizes = [8, 8], strides = [1, 1]} : vector<16x96xf32> to vector<8x8xf32>
    %14 = vector.extract_strided_slice %11 {offsets = [0, 32], sizes = [8, 8], strides = [1, 1]} : vector<16x96xf32> to vector<8x8xf32>
    %15 = vector.extract_strided_slice %11 {offsets = [0, 64], sizes = [8, 8], strides = [1, 1]} : vector<16x96xf32> to vector<8x8xf32>
    %16 = arith.truncf %13 : vector<8x8xf32> to vector<8x8xbf16>
    %17 = arith.truncf %14 : vector<8x8xf32> to vector<8x8xbf16>
    %cst_10 = arith.constant dense<0.000000e+00> : vector<8x8xf32>
    %18 = tpu.matmul %16, %17, %cst_10 {dimension_numbers = #tpu.dot_dimension_numbers<[1], [1], [0], [0], [0, 0, 1, 0], [], []>} : vector<8x8xbf16>, vector<8x8xbf16>, vector<8x8xf32> -> vector<8x8xf32>
    %19 = vector.broadcast %12 : vector<1x8xf32> to vector<8x8xf32>
    %20 = arith.addf %18, %19 : vector<8x8xf32>
    %cst_11 = arith.constant dense<0xFF800000> : vector<8xf32>
    %21 = vector.multi_reduction <maximumf>, %20, %cst_11 [1] : vector<8x8xf32> to vector<8xf32>
    %22 = vector.shape_cast %21 : vector<8xf32> to vector<8x1xf32>
    %23 = vector.broadcast %22 : vector<8x1xf32> to vector<8x8xf32>
    %24 = arith.subf %20, %23 : vector<8x8xf32>
    %25 = math.exp %24 : vector<8x8xf32>
    %cst_12 = arith.constant dense<0.000000e+00> : vector<8xf32>
    %26 = vector.multi_reduction <add>, %25, %cst_12 [1] : vector<8x8xf32> to vector<8xf32>
    %27 = vector.shape_cast %26 : vector<8xf32> to vector<8x1xf32>
    %28 = tpu.reciprocal %27 {approx = true} : vector<8x1xf32> -> vector<8x1xf32>
    %29 = vector.broadcast %28 : vector<8x1xf32> to vector<8x8xf32>
    %30 = arith.mulf %25, %29 : vector<8x8xf32>
    %31 = arith.truncf %30 : vector<8x8xf32> to vector<8x8xbf16>
    %32 = arith.truncf %15 : vector<8x8xf32> to vector<8x8xbf16>
    %cst_13 = arith.constant dense<0.000000e+00> : vector<8x8xf32>
    %33 = tpu.matmul %31, %32, %cst_13 {dimension_numbers = #tpu.dot_dimension_numbers<[1], [0], [0], [1], [0, 0, 1, 1], [], []>} : vector<8x8xbf16>, vector<8x8xbf16>, vector<8x8xf32> -> vector<8x8xf32>
    %c0_14 = arith.constant 0 : index
    %c0_15 = arith.constant 0 : index
    %34 = vector.load %arg8[%c0_14, %c0_15] : memref<16x32xf32, #tpu.memory_space<vmem>>, vector<8x8xf32>
    tpu.vector_store %arg8[%c0_14, %c0_15], %33 {strides = array<i32>} : memref<16x32xf32, #tpu.memory_space<vmem>>, vector<8x8xf32>,
    %35 = vector.extract_strided_slice %11 {offsets = [0, 8], sizes = [8, 8], strides = [1, 1]} : vector<16x96xf32> to vector<8x8xf32>
    %36 = vector.extract_strided_slice %11 {offsets = [0, 40], sizes = [8, 8], strides = [1, 1]} : vector<16x96xf32> to vector<8x8xf32>
    %37 = vector.extract_strided_slice %11 {offsets = [0, 72], sizes = [8, 8], strides = [1, 1]} : vector<16x96xf32> to vector<8x8xf32>
    %38 = arith.truncf %35 : vector<8x8xf32> to vector<8x8xbf16>
    %39 = arith.truncf %36 : vector<8x8xf32> to vector<8x8xbf16>
    %cst_16 = arith.constant dense<0.000000e+00> : vector<8x8xf32>
    %40 = tpu.matmul %38, %39, %cst_16 {dimension_numbers = #tpu.dot_dimension_numbers<[1], [1], [0], [0], [0, 0, 1, 0], [], []>} : vector<8x8xbf16>, vector<8x8xbf16>, vector<8x8xf32> -> vector<8x8xf32>
    %41 = vector.broadcast %12 : vector<1x8xf32> to vector<8x8xf32>
    %42 = arith.addf %40, %41 : vector<8x8xf32>
    %cst_17 = arith.constant dense<0xFF800000> : vector<8xf32>
    %43 = vector.multi_reduction <maximumf>, %42, %cst_17 [1] : vector<8x8xf32> to vector<8xf32>
    %44 = vector.shape_cast %43 : vector<8xf32> to vector<8x1xf32>
    %45 = vector.broadcast %44 : vector<8x1xf32> to vector<8x8xf32>
    %46 = arith.subf %42, %45 : vector<8x8xf32>
    %47 = math.exp %46 : vector<8x8xf32>
    %cst_18 = arith.constant dense<0.000000e+00> : vector<8xf32>
    %48 = vector.multi_reduction <add>, %47, %cst_18 [1] : vector<8x8xf32> to vector<8xf32>
    %49 = vector.shape_cast %48 : vector<8xf32> to vector<8x1xf32>
    %50 = tpu.reciprocal %49 {approx = true} : vector<8x1xf32> -> vector<8x1xf32>
    %51 = vector.broadcast %50 : vector<8x1xf32> to vector<8x8xf32>
    %52 = arith.mulf %47, %51 : vector<8x8xf32>
    %53 = arith.truncf %52 : vector<8x8xf32> to vector<8x8xbf16>
    %54 = arith.truncf %37 : vector<8x8xf32> to vector<8x8xbf16>
    %cst_19 = arith.constant dense<0.000000e+00> : vector<8x8xf32>
    %55 = tpu.matmul %53, %54, %cst_19 {dimension_numbers = #tpu.dot_dimension_numbers<[1], [0], [0], [1], [0, 0, 1, 1], [], []>} : vector<8x8xbf16>, vector<8x8xbf16>, vector<8x8xf32> -> vector<8x8xf32>
    %c0_20 = arith.constant 0 : index
    %c8 = arith.constant 8 : index
    %56 = vector.load %arg8[%c0_20, %c8] : memref<16x32xf32, #tpu.memory_space<vmem>>, vector<8x8xf32>
    tpu.vector_store %arg8[%c0_20, %c8], %55 {strides = array<i32>} : memref<16x32xf32, #tpu.memory_space<vmem>>, vector<8x8xf32>,
    %57 = vector.extract_strided_slice %11 {offsets = [0, 16], sizes = [8, 8], strides = [1, 1]} : vector<16x96xf32> to vector<8x8xf32>
    %58 = vector.extract_strided_slice %11 {offsets = [0, 48], sizes = [8, 8], strides = [1, 1]} : vector<16x96xf32> to vector<8x8xf32>
    %59 = vector.extract_strided_slice %11 {offsets = [0, 80], sizes = [8, 8], strides = [1, 1]} : vector<16x96xf32> to vector<8x8xf32>
    %60 = arith.truncf %57 : vector<8x8xf32> to vector<8x8xbf16>
    %61 = arith.truncf %58 : vector<8x8xf32> to vector<8x8xbf16>
    %cst_21 = arith.constant dense<0.000000e+00> : vector<8x8xf32>
    %62 = tpu.matmul %60, %61, %cst_21 {dimension_numbers = #tpu.dot_dimension_numbers<[1], [1], [0], [0], [0, 0, 1, 0], [], []>} : vector<8x8xbf16>, vector<8x8xbf16>, vector<8x8xf32> -> vector<8x8xf32>
    %63 = vector.broadcast %12 : vector<1x8xf32> to vector<8x8xf32>
    %64 = arith.addf %62, %63 : vector<8x8xf32>
    %cst_22 = arith.constant dense<0xFF800000> : vector<8xf32>
    %65 = vector.multi_reduction <maximumf>, %64, %cst_22 [1] : vector<8x8xf32> to vector<8xf32>
    %66 = vector.shape_cast %65 : vector<8xf32> to vector<8x1xf32>
    %67 = vector.broadcast %66 : vector<8x1xf32> to vector<8x8xf32>
    %68 = arith.subf %64, %67 : vector<8x8xf32>
    %69 = math.exp %68 : vector<8x8xf32>
    %cst_23 = arith.constant dense<0.000000e+00> : vector<8xf32>
    %70 = vector.multi_reduction <add>, %69, %cst_23 [1] : vector<8x8xf32> to vector<8xf32>
    %71 = vector.shape_cast %70 : vector<8xf32> to vector<8x1xf32>
    %72 = tpu.reciprocal %71 {approx = true} : vector<8x1xf32> -> vector<8x1xf32>
    %73 = vector.broadcast %72 : vector<8x1xf32> to vector<8x8xf32>
    %74 = arith.mulf %69, %73 : vector<8x8xf32>
    %75 = arith.truncf %74 : vector<8x8xf32> to vector<8x8xbf16>
    %76 = arith.truncf %59 : vector<8x8xf32> to vector<8x8xbf16>
    %cst_24 = arith.constant dense<0.000000e+00> : vector<8x8xf32>
    %77 = tpu.matmul %75, %76, %cst_24 {dimension_numbers = #tpu.dot_dimension_numbers<[1], [0], [0], [1], [0, 0, 1, 1], [], []>} : vector<8x8xbf16>, vector<8x8xbf16>, vector<8x8xf32> -> vector<8x8xf32>
    %c0_25 = arith.constant 0 : index
    %c16 = arith.constant 16 : index
    %78 = vector.load %arg8[%c0_25, %c16] : memref<16x32xf32, #tpu.memory_space<vmem>>, vector<8x8xf32>
    tpu.vector_store %arg8[%c0_25, %c16], %77 {strides = array<i32>} : memref<16x32xf32, #tpu.memory_space<vmem>>, vector<8x8xf32>,
    %79 = vector.extract_strided_slice %11 {offsets = [0, 24], sizes = [8, 8], strides = [1, 1]} : vector<16x96xf32> to vector<8x8xf32>
    %80 = vector.extract_strided_slice %11 {offsets = [0, 56], sizes = [8, 8], strides = [1, 1]} : vector<16x96xf32> to vector<8x8xf32>
    %81 = vector.extract_strided_slice %11 {offsets = [0, 88], sizes = [8, 8], strides = [1, 1]} : vector<16x96xf32> to vector<8x8xf32>
    %82 = arith.truncf %79 : vector<8x8xf32> to vector<8x8xbf16>
    %83 = arith.truncf %80 : vector<8x8xf32> to vector<8x8xbf16>
    %cst_26 = arith.constant dense<0.000000e+00> : vector<8x8xf32>
    %84 = tpu.matmul %82, %83, %cst_26 {dimension_numbers = #tpu.dot_dimension_numbers<[1], [1], [0], [0], [0, 0, 1, 0], [], []>} : vector<8x8xbf16>, vector<8x8xbf16>, vector<8x8xf32> -> vector<8x8xf32>
    %85 = vector.broadcast %12 : vector<1x8xf32> to vector<8x8xf32>
    %86 = arith.addf %84, %85 : vector<8x8xf32>
    %cst_27 = arith.constant dense<0xFF800000> : vector<8xf32>
    %87 = vector.multi_reduction <maximumf>, %86, %cst_27 [1] : vector<8x8xf32> to vector<8xf32>
    %88 = vector.shape_cast %87 : vector<8xf32> to vector<8x1xf32>
    %89 = vector.broadcast %88 : vector<8x1xf32> to vector<8x8xf32>
    %90 = arith.subf %86, %89 : vector<8x8xf32>
    %91 = math.exp %90 : vector<8x8xf32>
    %cst_28 = arith.constant dense<0.000000e+00> : vector<8xf32>
    %92 = vector.multi_reduction <add>, %91, %cst_28 [1] : vector<8x8xf32> to vector<8xf32>
    %93 = vector.shape_cast %92 : vector<8xf32> to vector<8x1xf32>
    %94 = tpu.reciprocal %93 {approx = true} : vector<8x1xf32> -> vector<8x1xf32>
    %95 = vector.broadcast %94 : vector<8x1xf32> to vector<8x8xf32>
    %96 = arith.mulf %91, %95 : vector<8x8xf32>
    %97 = arith.truncf %96 : vector<8x8xf32> to vector<8x8xbf16>
    %98 = arith.truncf %81 : vector<8x8xf32> to vector<8x8xbf16>
    %cst_29 = arith.constant dense<0.000000e+00> : vector<8x8xf32>
    %99 = tpu.matmul %97, %98, %cst_29 {dimension_numbers = #tpu.dot_dimension_numbers<[1], [0], [0], [1], [0, 0, 1, 1], [], []>} : vector<8x8xbf16>, vector<8x8xbf16>, vector<8x8xf32> -> vector<8x8xf32>
    %c0_30 = arith.constant 0 : index
    %c24 = arith.constant 24 : index
    %100 = vector.load %arg8[%c0_30, %c24] : memref<16x32xf32, #tpu.memory_space<vmem>>, vector<8x8xf32>
    tpu.vector_store %arg8[%c0_30, %c24], %99 {strides = array<i32>} : memref<16x32xf32, #tpu.memory_space<vmem>>, vector<8x8xf32>,
    %c1 = arith.constant 1 : index
    %c0_31 = arith.constant 0 : index
    %101 = vector.load %arg2[%c1, %c0_31] : memref<2x8xf32, #tpu.memory_space<vmem>>, vector<1x8xf32>
    %102 = vector.extract_strided_slice %11 {offsets = [8, 0], sizes = [8, 8], strides = [1, 1]} : vector<16x96xf32> to vector<8x8xf32>
    %103 = vector.extract_strided_slice %11 {offsets = [8, 32], sizes = [8, 8], strides = [1, 1]} : vector<16x96xf32> to vector<8x8xf32>
    %104 = vector.extract_strided_slice %11 {offsets = [8, 64], sizes = [8, 8], strides = [1, 1]} : vector<16x96xf32> to vector<8x8xf32>
    %105 = arith.truncf %102 : vector<8x8xf32> to vector<8x8xbf16>
    %106 = arith.truncf %103 : vector<8x8xf32> to vector<8x8xbf16>
    %cst_32 = arith.constant dense<0.000000e+00> : vector<8x8xf32>
    %107 = tpu.matmul %105, %106, %cst_32 {dimension_numbers = #tpu.dot_dimension_numbers<[1], [1], [0], [0], [0, 0, 1, 0], [], []>} : vector<8x8xbf16>, vector<8x8xbf16>, vector<8x8xf32> -> vector<8x8xf32>
    %108 = vector.broadcast %101 : vector<1x8xf32> to vector<8x8xf32>
    %109 = arith.addf %107, %108 : vector<8x8xf32>
    %cst_33 = arith.constant dense<0xFF800000> : vector<8xf32>
    %110 = vector.multi_reduction <maximumf>, %109, %cst_33 [1] : vector<8x8xf32> to vector<8xf32>
    %111 = vector.shape_cast %110 : vector<8xf32> to vector<8x1xf32>
    %112 = vector.broadcast %111 : vector<8x1xf32> to vector<8x8xf32>
    %113 = arith.subf %109, %112 : vector<8x8xf32>
    %114 = math.exp %113 : vector<8x8xf32>
    %cst_34 = arith.constant dense<0.000000e+00> : vector<8xf32>
    %115 = vector.multi_reduction <add>, %114, %cst_34 [1] : vector<8x8xf32> to vector<8xf32>
    %116 = vector.shape_cast %115 : vector<8xf32> to vector<8x1xf32>
    %117 = tpu.reciprocal %116 {approx = true} : vector<8x1xf32> -> vector<8x1xf32>
    %118 = vector.broadcast %117 : vector<8x1xf32> to vector<8x8xf32>
    %119 = arith.mulf %114, %118 : vector<8x8xf32>
    %120 = arith.truncf %119 : vector<8x8xf32> to vector<8x8xbf16>
    %121 = arith.truncf %104 : vector<8x8xf32> to vector<8x8xbf16>
    %cst_35 = arith.constant dense<0.000000e+00> : vector<8x8xf32>
    %122 = tpu.matmul %120, %121, %cst_35 {dimension_numbers = #tpu.dot_dimension_numbers<[1], [0], [0], [1], [0, 0, 1, 1], [], []>} : vector<8x8xbf16>, vector<8x8xbf16>, vector<8x8xf32> -> vector<8x8xf32>
    %c8_36 = arith.constant 8 : index
    %c0_37 = arith.constant 0 : index
    %123 = vector.load %arg8[%c8_36, %c0_37] : memref<16x32xf32, #tpu.memory_space<vmem>>, vector<8x8xf32>
    tpu.vector_store %arg8[%c8_36, %c0_37], %122 {strides = array<i32>} : memref<16x32xf32, #tpu.memory_space<vmem>>, vector<8x8xf32>,
    %124 = vector.extract_strided_slice %11 {offsets = [8, 8], sizes = [8, 8], strides = [1, 1]} : vector<16x96xf32> to vector<8x8xf32>
    %125 = vector.extract_strided_slice %11 {offsets = [8, 40], sizes = [8, 8], strides = [1, 1]} : vector<16x96xf32> to vector<8x8xf32>
    %126 = vector.extract_strided_slice %11 {offsets = [8, 72], sizes = [8, 8], strides = [1, 1]} : vector<16x96xf32> to vector<8x8xf32>
    %127 = arith.truncf %124 : vector<8x8xf32> to vector<8x8xbf16>
    %128 = arith.truncf %125 : vector<8x8xf32> to vector<8x8xbf16>
    %cst_38 = arith.constant dense<0.000000e+00> : vector<8x8xf32>
    %129 = tpu.matmul %127, %128, %cst_38 {dimension_numbers = #tpu.dot_dimension_numbers<[1], [1], [0], [0], [0, 0, 1, 0], [], []>} : vector<8x8xbf16>, vector<8x8xbf16>, vector<8x8xf32> -> vector<8x8xf32>
    %130 = vector.broadcast %101 : vector<1x8xf32> to vector<8x8xf32>
    %131 = arith.addf %129, %130 : vector<8x8xf32>
    %cst_39 = arith.constant dense<0xFF800000> : vector<8xf32>
    %132 = vector.multi_reduction <maximumf>, %131, %cst_39 [1] : vector<8x8xf32> to vector<8xf32>
    %133 = vector.shape_cast %132 : vector<8xf32> to vector<8x1xf32>
    %134 = vector.broadcast %133 : vector<8x1xf32> to vector<8x8xf32>
    %135 = arith.subf %131, %134 : vector<8x8xf32>
    %136 = math.exp %135 : vector<8x8xf32>
    %cst_40 = arith.constant dense<0.000000e+00> : vector<8xf32>
    %137 = vector.multi_reduction <add>, %136, %cst_40 [1] : vector<8x8xf32> to vector<8xf32>
    %138 = vector.shape_cast %137 : vector<8xf32> to vector<8x1xf32>
    %139 = tpu.reciprocal %138 {approx = true} : vector<8x1xf32> -> vector<8x1xf32>
    %140 = vector.broadcast %139 : vector<8x1xf32> to vector<8x8xf32>
    %141 = arith.mulf %136, %140 : vector<8x8xf32>
    %142 = arith.truncf %141 : vector<8x8xf32> to vector<8x8xbf16>
    %143 = arith.truncf %126 : vector<8x8xf32> to vector<8x8xbf16>
    %cst_41 = arith.constant dense<0.000000e+00> : vector<8x8xf32>
    %144 = tpu.matmul %142, %143, %cst_41 {dimension_numbers = #tpu.dot_dimension_numbers<[1], [0], [0], [1], [0, 0, 1, 1], [], []>} : vector<8x8xbf16>, vector<8x8xbf16>, vector<8x8xf32> -> vector<8x8xf32>
    %c8_42 = arith.constant 8 : index
    %c8_43 = arith.constant 8 : index
    %145 = vector.load %arg8[%c8_42, %c8_43] : memref<16x32xf32, #tpu.memory_space<vmem>>, vector<8x8xf32>
    tpu.vector_store %arg8[%c8_42, %c8_43], %144 {strides = array<i32>} : memref<16x32xf32, #tpu.memory_space<vmem>>, vector<8x8xf32>,
    %146 = vector.extract_strided_slice %11 {offsets = [8, 16], sizes = [8, 8], strides = [1, 1]} : vector<16x96xf32> to vector<8x8xf32>
    %147 = vector.extract_strided_slice %11 {offsets = [8, 48], sizes = [8, 8], strides = [1, 1]} : vector<16x96xf32> to vector<8x8xf32>
    %148 = vector.extract_strided_slice %11 {offsets = [8, 80], sizes = [8, 8], strides = [1, 1]} : vector<16x96xf32> to vector<8x8xf32>
    %149 = arith.truncf %146 : vector<8x8xf32> to vector<8x8xbf16>
    %150 = arith.truncf %147 : vector<8x8xf32> to vector<8x8xbf16>
    %cst_44 = arith.constant dense<0.000000e+00> : vector<8x8xf32>
    %151 = tpu.matmul %149, %150, %cst_44 {dimension_numbers = #tpu.dot_dimension_numbers<[1], [1], [0], [0], [0, 0, 1, 0], [], []>} : vector<8x8xbf16>, vector<8x8xbf16>, vector<8x8xf32> -> vector<8x8xf32>
    %152 = vector.broadcast %101 : vector<1x8xf32> to vector<8x8xf32>
    %153 = arith.addf %151, %152 : vector<8x8xf32>
    %cst_45 = arith.constant dense<0xFF800000> : vector<8xf32>
    %154 = vector.multi_reduction <maximumf>, %153, %cst_45 [1] : vector<8x8xf32> to vector<8xf32>
    %155 = vector.shape_cast %154 : vector<8xf32> to vector<8x1xf32>
    %156 = vector.broadcast %155 : vector<8x1xf32> to vector<8x8xf32>
    %157 = arith.subf %153, %156 : vector<8x8xf32>
    %158 = math.exp %157 : vector<8x8xf32>
    %cst_46 = arith.constant dense<0.000000e+00> : vector<8xf32>
    %159 = vector.multi_reduction <add>, %158, %cst_46 [1] : vector<8x8xf32> to vector<8xf32>
    %160 = vector.shape_cast %159 : vector<8xf32> to vector<8x1xf32>
    %161 = tpu.reciprocal %160 {approx = true} : vector<8x1xf32> -> vector<8x1xf32>
    %162 = vector.broadcast %161 : vector<8x1xf32> to vector<8x8xf32>
    %163 = arith.mulf %158, %162 : vector<8x8xf32>
    %164 = arith.truncf %163 : vector<8x8xf32> to vector<8x8xbf16>
    %165 = arith.truncf %148 : vector<8x8xf32> to vector<8x8xbf16>
    %cst_47 = arith.constant dense<0.000000e+00> : vector<8x8xf32>
    %166 = tpu.matmul %164, %165, %cst_47 {dimension_numbers = #tpu.dot_dimension_numbers<[1], [0], [0], [1], [0, 0, 1, 1], [], []>} : vector<8x8xbf16>, vector<8x8xbf16>, vector<8x8xf32> -> vector<8x8xf32>
    %c8_48 = arith.constant 8 : index
    %c16_49 = arith.constant 16 : index
    %167 = vector.load %arg8[%c8_48, %c16_49] : memref<16x32xf32, #tpu.memory_space<vmem>>, vector<8x8xf32>
    tpu.vector_store %arg8[%c8_48, %c16_49], %166 {strides = array<i32>} : memref<16x32xf32, #tpu.memory_space<vmem>>, vector<8x8xf32>,
    %168 = vector.extract_strided_slice %11 {offsets = [8, 24], sizes = [8, 8], strides = [1, 1]} : vector<16x96xf32> to vector<8x8xf32>
    %169 = vector.extract_strided_slice %11 {offsets = [8, 56], sizes = [8, 8], strides = [1, 1]} : vector<16x96xf32> to vector<8x8xf32>
    %170 = vector.extract_strided_slice %11 {offsets = [8, 88], sizes = [8, 8], strides = [1, 1]} : vector<16x96xf32> to vector<8x8xf32>
    %171 = arith.truncf %168 : vector<8x8xf32> to vector<8x8xbf16>
    %172 = arith.truncf %169 : vector<8x8xf32> to vector<8x8xbf16>
    %cst_50 = arith.constant dense<0.000000e+00> : vector<8x8xf32>
    %173 = tpu.matmul %171, %172, %cst_50 {dimension_numbers = #tpu.dot_dimension_numbers<[1], [1], [0], [0], [0, 0, 1, 0], [], []>} : vector<8x8xbf16>, vector<8x8xbf16>, vector<8x8xf32> -> vector<8x8xf32>
    %174 = vector.broadcast %101 : vector<1x8xf32> to vector<8x8xf32>
    %175 = arith.addf %173, %174 : vector<8x8xf32>
    %cst_51 = arith.constant dense<0xFF800000> : vector<8xf32>
    %176 = vector.multi_reduction <maximumf>, %175, %cst_51 [1] : vector<8x8xf32> to vector<8xf32>
    %177 = vector.shape_cast %176 : vector<8xf32> to vector<8x1xf32>
    %178 = vector.broadcast %177 : vector<8x1xf32> to vector<8x8xf32>
    %179 = arith.subf %175, %178 : vector<8x8xf32>
    %180 = math.exp %179 : vector<8x8xf32>
    %cst_52 = arith.constant dense<0.000000e+00> : vector<8xf32>
    %181 = vector.multi_reduction <add>, %180, %cst_52 [1] : vector<8x8xf32> to vector<8xf32>
    %182 = vector.shape_cast %181 : vector<8xf32> to vector<8x1xf32>
    %183 = tpu.reciprocal %182 {approx = true} : vector<8x1xf32> -> vector<8x1xf32>
    %184 = vector.broadcast %183 : vector<8x1xf32> to vector<8x8xf32>
    %185 = arith.mulf %180, %184 : vector<8x8xf32>
    %186 = arith.truncf %185 : vector<8x8xf32> to vector<8x8xbf16>
    %187 = arith.truncf %170 : vector<8x8xf32> to vector<8x8xbf16>
    %cst_53 = arith.constant dense<0.000000e+00> : vector<8x8xf32>
    %188 = tpu.matmul %186, %187, %cst_53 {dimension_numbers = #tpu.dot_dimension_numbers<[1], [0], [0], [1], [0, 0, 1, 1], [], []>} : vector<8x8xbf16>, vector<8x8xbf16>, vector<8x8xf32> -> vector<8x8xf32>
    %c8_54 = arith.constant 8 : index
    %c24_55 = arith.constant 24 : index
    %189 = vector.load %arg8[%c8_54, %c24_55] : memref<16x32xf32, #tpu.memory_space<vmem>>, vector<8x8xf32>
    tpu.vector_store %arg8[%c8_54, %c24_55], %188 {strides = array<i32>} : memref<16x32xf32, #tpu.memory_space<vmem>>, vector<8x8xf32>,
    %c0_56 = arith.constant 0 : index
    %c0_57 = arith.constant 0 : index
    %190 = vector.load %arg8[%c0_56, %c0_57] : memref<16x32xf32, #tpu.memory_space<vmem>>, vector<16x32xf32>
    %c0_58 = arith.constant 0 : index
    %c32 = arith.constant 32 : index
    %c0_59 = arith.constant 0 : index
    %191 = vector.load %arg5[%c0_58, %c32, %c0_59] : memref<1x256x128xbf16, #tpu.memory_space<vmem>>, vector<1x32x32xbf16>
    %192 = vector.shape_cast %191 : vector<1x32x32xbf16> to vector<32x32xbf16>
    %193 = arith.truncf %190 : vector<16x32xf32> to vector<16x32xbf16>
    %cst_60 = arith.constant dense<0.000000e+00> : vector<16x32xf32>
    %194 = tpu.matmul %193, %192, %cst_60 {dimension_numbers = #tpu.dot_dimension_numbers<[1], [0], [0], [1], [0, 0, 1, 1], [], []>} : vector<16x32xbf16>, vector<32x32xbf16>, vector<16x32xf32> -> vector<16x32xf32>
    %c0_61 = arith.constant 0 : index
    %c1_62 = arith.constant 1 : index
    %c0_63 = arith.constant 0 : index
    %195 = vector.load %arg4[%c0_61, %c1_62, %c0_63] : memref<1x16x128xf32, #tpu.memory_space<vmem>>, vector<1x1x32xf32>
    %196 = vector.shape_cast %195 : vector<1x1x32xf32> to vector<1x32xf32>
    %197 = vector.broadcast %196 : vector<1x32xf32> to vector<16x32xf32>
    %198 = arith.addf %194, %197 : vector<16x32xf32>
    %c0_64 = arith.constant 0 : index
    %c64 = arith.constant 64 : index
    %c0_65 = arith.constant 0 : index
    %199 = vector.load %arg5[%c0_64, %c64, %c0_65] : memref<1x256x128xbf16, #tpu.memory_space<vmem>>, vector<1x32x16xbf16>
    %200 = vector.shape_cast %199 : vector<1x32x16xbf16> to vector<32x16xbf16>
    %201 = arith.truncf %198 : vector<16x32xf32> to vector<16x32xbf16>
    %cst_66 = arith.constant dense<0.000000e+00> : vector<16x16xf32>
    %202 = tpu.matmul %201, %200, %cst_66 {dimension_numbers = #tpu.dot_dimension_numbers<[1], [0], [0], [1], [0, 0, 1, 1], [], []>} : vector<16x32xbf16>, vector<32x16xbf16>, vector<16x16xf32> -> vector<16x16xf32>
    %c0_67 = arith.constant 0 : index
    %c2 = arith.constant 2 : index
    %c0_68 = arith.constant 0 : index
    %203 = vector.load %arg4[%c0_67, %c2, %c0_68] : memref<1x16x128xf32, #tpu.memory_space<vmem>>, vector<1x1x16xf32>
    %204 = vector.shape_cast %203 : vector<1x1x16xf32> to vector<1x16xf32>
    %205 = vector.broadcast %204 : vector<1x16xf32> to vector<16x16xf32>
    %206 = arith.addf %202, %205 : vector<16x16xf32>
    %cst_69 = arith.constant 5.000000e-01 : f32
    %207 = vector.broadcast %cst_69 : f32 to vector<16x16xf32>
    %208 = arith.mulf %207, %206 : vector<16x16xf32>
    %cst_70 = arith.constant 0.707106769 : f32
    %209 = vector.broadcast %cst_70 : f32 to vector<16x16xf32>
    %210 = arith.mulf %206, %209 : vector<16x16xf32>
    %211 = math.erf %210 : vector<16x16xf32>
    %cst_71 = arith.constant 1.000000e+00 : f32
    %212 = vector.broadcast %cst_71 : f32 to vector<16x16xf32>
    %213 = arith.addf %212, %211 : vector<16x16xf32>
    %214 = arith.mulf %208, %213 : vector<16x16xf32>
    %c0_72 = arith.constant 0 : index
    %c96 = arith.constant 96 : index
    %c0_73 = arith.constant 0 : index
    %215 = vector.load %arg5[%c0_72, %c96, %c0_73] : memref<1x256x128xbf16, #tpu.memory_space<vmem>>, vector<1x16x32xbf16>
    %216 = vector.shape_cast %215 : vector<1x16x32xbf16> to vector<16x32xbf16>
    %217 = arith.truncf %214 : vector<16x16xf32> to vector<16x16xbf16>
    %cst_74 = arith.constant dense<0.000000e+00> : vector<16x32xf32>
    %218 = tpu.matmul %217, %216, %cst_74 {dimension_numbers = #tpu.dot_dimension_numbers<[1], [0], [0], [1], [0, 0, 1, 1], [], []>} : vector<16x16xbf16>, vector<16x32xbf16>, vector<16x32xf32> -> vector<16x32xf32>
    %c0_75 = arith.constant 0 : index
    %c3 = arith.constant 3 : index
    %c0_76 = arith.constant 0 : index
    %219 = vector.load %arg4[%c0_75, %c3, %c0_76] : memref<1x16x128xf32, #tpu.memory_space<vmem>>, vector<1x1x32xf32>
    %220 = vector.shape_cast %219 : vector<1x1x32xf32> to vector<1x32xf32>
    %221 = vector.broadcast %220 : vector<1x32xf32> to vector<16x32xf32>
    %222 = arith.addf %218, %221 : vector<16x32xf32>
    %223 = arith.addf %222, %198 : vector<16x32xf32>
    %224 = arith.addf %223, %3 : vector<16x32xf32>
    %c0_77 = arith.constant 0 : index
    %c4 = arith.constant 4 : index
    %c0_78 = arith.constant 0 : index
    %225 = vector.load %arg4[%c0_77, %c4, %c0_78] : memref<1x16x128xf32, #tpu.memory_space<vmem>>, vector<1x1x32xf32>
    %226 = vector.shape_cast %225 : vector<1x1x32xf32> to vector<1x32xf32>
    %c0_79 = arith.constant 0 : index
    %c5 = arith.constant 5 : index
    %c0_80 = arith.constant 0 : index
    %227 = vector.load %arg4[%c0_79, %c5, %c0_80] : memref<1x16x128xf32, #tpu.memory_space<vmem>>, vector<1x1x32xf32>
    %228 = vector.shape_cast %227 : vector<1x1x32xf32> to vector<1x32xf32>
    %cst_81 = arith.constant dense<0.000000e+00> : vector<16xf32>
    %229 = vector.multi_reduction <add>, %224, %cst_81 [1] : vector<16x32xf32> to vector<16xf32>
    %230 = vector.shape_cast %229 : vector<16xf32> to vector<16x1xf32>
    %cst_82 = arith.constant 3.200000e+01 : f32
    %231 = vector.broadcast %cst_82 : f32 to vector<16x1xf32>
    %232 = arith.divf %230, %231 : vector<16x1xf32>
    %233 = vector.broadcast %232 : vector<16x1xf32> to vector<16x32xf32>
    %234 = arith.subf %224, %233 : vector<16x32xf32>
    %235 = arith.mulf %234, %234 : vector<16x32xf32>
    %cst_83 = arith.constant dense<0.000000e+00> : vector<16xf32>
    %236 = vector.multi_reduction <add>, %235, %cst_83 [1] : vector<16x32xf32> to vector<16xf32>
    %237 = vector.shape_cast %236 : vector<16xf32> to vector<16x1xf32>
    %cst_84 = arith.constant 3.200000e+01 : f32
    %238 = vector.broadcast %cst_84 : f32 to vector<16x1xf32>
    %239 = arith.divf %237, %238 : vector<16x1xf32>
    %240 = vector.broadcast %232 : vector<16x1xf32> to vector<16x32xf32>
    %241 = arith.subf %224, %240 : vector<16x32xf32>
    %cst_85 = arith.constant 9.99999996E-13 : f32
    %242 = vector.broadcast %cst_85 : f32 to vector<16x1xf32>
    %243 = arith.addf %239, %242 : vector<16x1xf32>
    %244 = math.rsqrt %243 : vector<16x1xf32>
    %245 = vector.broadcast %244 : vector<16x1xf32> to vector<16x32xf32>
    %246 = arith.mulf %241, %245 : vector<16x32xf32>
    %247 = vector.broadcast %226 : vector<1x32xf32> to vector<16x32xf32>
    %248 = arith.mulf %246, %247 : vector<16x32xf32>
    %249 = vector.broadcast %228 : vector<1x32xf32> to vector<16x32xf32>
    %250 = arith.addf %248, %249 : vector<16x32xf32>
    %c0_86 = arith.constant 0 : index
    %c112 = arith.constant 112 : index
    %c0_87 = arith.constant 0 : index
    %251 = vector.load %arg5[%c0_86, %c112, %c0_87] : memref<1x256x128xbf16, #tpu.memory_space<vmem>>, vector<1x32x64xbf16>
    %252 = vector.shape_cast %251 : vector<1x32x64xbf16> to vector<32x64xbf16>
    %253 = arith.truncf %250 : vector<16x32xf32> to vector<16x32xbf16>
    %cst_88 = arith.constant dense<0.000000e+00> : vector<16x64xf32>
    %254 = tpu.matmul %253, %252, %cst_88 {dimension_numbers = #tpu.dot_dimension_numbers<[1], [0], [0], [1], [0, 0, 1, 1], [], []>} : vector<16x32xbf16>, vector<32x64xbf16>, vector<16x64xf32> -> vector<16x64xf32>
    %c0_89 = arith.constant 0 : index
    %c6 = arith.constant 6 : index
    %c0_90 = arith.constant 0 : index
    %255 = vector.load %arg4[%c0_89, %c6, %c0_90] : memref<1x16x128xf32, #tpu.memory_space<vmem>>, vector<1x1x64xf32>
    %256 = vector.shape_cast %255 : vector<1x1x64xf32> to vector<1x64xf32>
    %257 = vector.broadcast %256 : vector<1x64xf32> to vector<16x64xf32>
    %258 = arith.addf %254, %257 : vector<16x64xf32>
    %cst_91 = arith.constant 5.000000e-01 : f32
    %259 = vector.broadcast %cst_91 : f32 to vector<16x64xf32>
    %260 = arith.mulf %259, %258 : vector<16x64xf32>
    %cst_92 = arith.constant 0.707106769 : f32
    %261 = vector.broadcast %cst_92 : f32 to vector<16x64xf32>
    %262 = arith.mulf %258, %261 : vector<16x64xf32>
    %263 = math.erf %262 : vector<16x64xf32>
    %cst_93 = arith.constant 1.000000e+00 : f32
    %264 = vector.broadcast %cst_93 : f32 to vector<16x64xf32>
    %265 = arith.addf %264, %263 : vector<16x64xf32>
    %266 = arith.mulf %260, %265 : vector<16x64xf32>
    %c0_94 = arith.constant 0 : index
    %c144 = arith.constant 144 : index
    %c0_95 = arith.constant 0 : index
    %267 = vector.load %arg5[%c0_94, %c144, %c0_95] : memref<1x256x128xbf16, #tpu.memory_space<vmem>>, vector<1x64x32xbf16>
    %268 = vector.shape_cast %267 : vector<1x64x32xbf16> to vector<64x32xbf16>
    %269 = arith.truncf %266 : vector<16x64xf32> to vector<16x64xbf16>
    %cst_96 = arith.constant dense<0.000000e+00> : vector<16x32xf32>
    %270 = tpu.matmul %269, %268, %cst_96 {dimension_numbers = #tpu.dot_dimension_numbers<[1], [0], [0], [1], [0, 0, 1, 1], [], []>} : vector<16x64xbf16>, vector<64x32xbf16>, vector<16x32xf32> -> vector<16x32xf32>
    %c0_97 = arith.constant 0 : index
    %c7 = arith.constant 7 : index
    %c0_98 = arith.constant 0 : index
    %271 = vector.load %arg4[%c0_97, %c7, %c0_98] : memref<1x16x128xf32, #tpu.memory_space<vmem>>, vector<1x1x32xf32>
    %272 = vector.shape_cast %271 : vector<1x1x32xf32> to vector<1x32xf32>
    %273 = vector.broadcast %272 : vector<1x32xf32> to vector<16x32xf32>
    %274 = arith.addf %270, %273 : vector<16x32xf32>
    %c0_99 = arith.constant 0 : index
    %c208 = arith.constant 208 : index
    %c0_100 = arith.constant 0 : index
    %275 = vector.load %arg5[%c0_99, %c208, %c0_100] : memref<1x256x128xbf16, #tpu.memory_space<vmem>>, vector<1x32x16xbf16>
    %276 = vector.shape_cast %275 : vector<1x32x16xbf16> to vector<32x16xbf16>
    %277 = arith.truncf %274 : vector<16x32xf32> to vector<16x32xbf16>
    %cst_101 = arith.constant dense<0.000000e+00> : vector<16x16xf32>
    %278 = tpu.matmul %277, %276, %cst_101 {dimension_numbers = #tpu.dot_dimension_numbers<[1], [0], [0], [1], [0, 0, 1, 1], [], []>} : vector<16x32xbf16>, vector<32x16xbf16>, vector<16x16xf32> -> vector<16x16xf32>
    %c0_102 = arith.constant 0 : index
    %c8_103 = arith.constant 8 : index
    %c0_104 = arith.constant 0 : index
    %279 = vector.load %arg4[%c0_102, %c8_103, %c0_104] : memref<1x16x128xf32, #tpu.memory_space<vmem>>, vector<1x1x16xf32>
    %280 = vector.shape_cast %279 : vector<1x1x16xf32> to vector<1x16xf32>
    %281 = vector.broadcast %280 : vector<1x16xf32> to vector<16x16xf32>
    %282 = arith.addf %278, %281 : vector<16x16xf32>
    %cst_105 = arith.constant 5.000000e-01 : f32
    %283 = vector.broadcast %cst_105 : f32 to vector<16x16xf32>
    %284 = arith.mulf %283, %282 : vector<16x16xf32>
    %cst_106 = arith.constant 0.707106769 : f32
    %285 = vector.broadcast %cst_106 : f32 to vector<16x16xf32>
    %286 = arith.mulf %282, %285 : vector<16x16xf32>
    %287 = math.erf %286 : vector<16x16xf32>
    %cst_107 = arith.constant 1.000000e+00 : f32
    %288 = vector.broadcast %cst_107 : f32 to vector<16x16xf32>
    %289 = arith.addf %288, %287 : vector<16x16xf32>
    %290 = arith.mulf %284, %289 : vector<16x16xf32>
    %c0_108 = arith.constant 0 : index
    %c240 = arith.constant 240 : index
    %c0_109 = arith.constant 0 : index
    %291 = vector.load %arg5[%c0_108, %c240, %c0_109] : memref<1x256x128xbf16, #tpu.memory_space<vmem>>, vector<1x16x32xbf16>
    %292 = vector.shape_cast %291 : vector<1x16x32xbf16> to vector<16x32xbf16>
    %293 = arith.truncf %290 : vector<16x16xf32> to vector<16x16xbf16>
    %cst_110 = arith.constant dense<0.000000e+00> : vector<16x32xf32>
    %294 = tpu.matmul %293, %292, %cst_110 {dimension_numbers = #tpu.dot_dimension_numbers<[1], [0], [0], [1], [0, 0, 1, 1], [], []>} : vector<16x16xbf16>, vector<16x32xbf16>, vector<16x32xf32> -> vector<16x32xf32>
    %c0_111 = arith.constant 0 : index
    %c9 = arith.constant 9 : index
    %c0_112 = arith.constant 0 : index
    %295 = vector.load %arg4[%c0_111, %c9, %c0_112] : memref<1x16x128xf32, #tpu.memory_space<vmem>>, vector<1x1x32xf32>
    %296 = vector.shape_cast %295 : vector<1x1x32xf32> to vector<1x32xf32>
    %297 = vector.broadcast %296 : vector<1x32xf32> to vector<16x32xf32>
    %298 = arith.addf %294, %297 : vector<16x32xf32>
    %299 = arith.addf %298, %274 : vector<16x32xf32>
    %300 = arith.addf %299, %250 : vector<16x32xf32>
    %c0_113 = arith.constant 0 : index
    %c10 = arith.constant 10 : index
    %c0_114 = arith.constant 0 : index
    %301 = vector.load %arg4[%c0_113, %c10, %c0_114] : memref<1x16x128xf32, #tpu.memory_space<vmem>>, vector<1x1x32xf32>
    %302 = vector.shape_cast %301 : vector<1x1x32xf32> to vector<1x32xf32>
    %c0_115 = arith.constant 0 : index
    %c11 = arith.constant 11 : index
    %c0_116 = arith.constant 0 : index
    %303 = vector.load %arg4[%c0_115, %c11, %c0_116] : memref<1x16x128xf32, #tpu.memory_space<vmem>>, vector<1x1x32xf32>
    %304 = vector.shape_cast %303 : vector<1x1x32xf32> to vector<1x32xf32>
    %cst_117 = arith.constant dense<0.000000e+00> : vector<16xf32>
    %305 = vector.multi_reduction <add>, %300, %cst_117 [1] : vector<16x32xf32> to vector<16xf32>
    %306 = vector.shape_cast %305 : vector<16xf32> to vector<16x1xf32>
    %cst_118 = arith.constant 3.200000e+01 : f32
    %307 = vector.broadcast %cst_118 : f32 to vector<16x1xf32>
    %308 = arith.divf %306, %307 : vector<16x1xf32>
    %309 = vector.broadcast %308 : vector<16x1xf32> to vector<16x32xf32>
    %310 = arith.subf %300, %309 : vector<16x32xf32>
    %311 = arith.mulf %310, %310 : vector<16x32xf32>
    %cst_119 = arith.constant dense<0.000000e+00> : vector<16xf32>
    %312 = vector.multi_reduction <add>, %311, %cst_119 [1] : vector<16x32xf32> to vector<16xf32>
    %313 = vector.shape_cast %312 : vector<16xf32> to vector<16x1xf32>
    %cst_120 = arith.constant 3.200000e+01 : f32
    %314 = vector.broadcast %cst_120 : f32 to vector<16x1xf32>
    %315 = arith.divf %313, %314 : vector<16x1xf32>
    %316 = vector.broadcast %308 : vector<16x1xf32> to vector<16x32xf32>
    %317 = arith.subf %300, %316 : vector<16x32xf32>
    %cst_121 = arith.constant 9.99999996E-13 : f32
    %318 = vector.broadcast %cst_121 : f32 to vector<16x1xf32>
    %319 = arith.addf %315, %318 : vector<16x1xf32>
    %320 = math.rsqrt %319 : vector<16x1xf32>
    %321 = vector.broadcast %320 : vector<16x1xf32> to vector<16x32xf32>
    %322 = arith.mulf %317, %321 : vector<16x32xf32>
    %323 = vector.broadcast %302 : vector<1x32xf32> to vector<16x32xf32>
    %324 = arith.mulf %322, %323 : vector<16x32xf32>
    %325 = vector.broadcast %304 : vector<1x32xf32> to vector<16x32xf32>
    %326 = arith.addf %324, %325 : vector<16x32xf32>
    %c0_122 = arith.constant 0 : index
    %c0_123 = arith.constant 0 : index
    %327 = vector.load %arg7[%c0_122, %c0_123] : memref<16x32xf32, #tpu.memory_space<vmem>>, vector<16x32xf32>
    tpu.vector_store %arg7[%c0_122, %c0_123], %326 {strides = array<i32>} : memref<16x32xf32, #tpu.memory_space<vmem>>, vector<16x32xf32>,
    %c1_i32 = arith.constant 1 : i32
    %328 = arith.cmpi eq, %arg0, %c1_i32 : i32
    %329 = arith.extui %328 : i1 to i32
    %c0_i32_124 = arith.constant 0 : i32
    %330 = arith.cmpi ne, %329, %c0_i32_124 : i32
    scf.if %330 {
      %c0_125 = arith.constant 0 : index
      %c0_126 = arith.constant 0 : index
      %331 = vector.load %arg6[%c0_125, %c0_126] : memref<16x32xf32, #tpu.memory_space<vmem>>, vector<16x32xf32>
      tpu.vector_store %arg6[%c0_125, %c0_126], %326 {strides = array<i32>} : memref<16x32xf32, #tpu.memory_space<vmem>>, vector<16x32xf32>,
    } else {
    }
    return
  }
  func.func @transform_0(%arg0: i32) -> (i32, i32) {
    %c0_i32 = arith.constant 0 : i32
    %c0_i32_0 = arith.constant 0 : i32
    %c0_i32_1 = arith.constant 0 : i32
    return %c0_i32, %c0_i32_0 : i32, i32
  }
  func.func @transform_1(%arg0: i32) -> (i32, i32) {
    %c0_i32 = arith.constant 0 : i32
    %c0_i32_0 = arith.constant 0 : i32
    %c0_i32_1 = arith.constant 0 : i32
    return %c0_i32, %c0_i32_0 : i32, i32
  }
  func.func @transform_2(%arg0: i32) -> (i32, i32) {
    %c0_i32 = arith.constant 0 : i32
    %c0_i32_0 = arith.constant 0 : i32
    %c0_i32_1 = arith.constant 0 : i32
    return %c0_i32, %c0_i32_0 : i32, i32
  }
  func.func @transform_3(%arg0: i32) -> (i32, i32, i32) {
    %c0_i32 = arith.constant 0 : i32
    %c0_i32_0 = arith.constant 0 : i32
    %c0_i32_1 = arith.constant 0 : i32
    return %arg0, %c0_i32, %c0_i32_0 : i32, i32, i32
  }
  func.func @transform_4(%arg0: i32) -> (i32, i32, i32) {
    %c0_i32 = arith.constant 0 : i32
    %c0_i32_0 = arith.constant 0 : i32
    %c0_i32_1 = arith.constant 0 : i32
    return %arg0, %c0_i32, %c0_i32_0 : i32, i32, i32
  }
  func.func @transform_5(%arg0: i32) -> (i32, i32) {
    %c0_i32 = arith.constant 0 : i32
    %c0_i32_0 = arith.constant 0 : i32
    %c0_i32_1 = arith.constant 0 : i32
    return %c0_i32, %c0_i32_0 : i32, i32
  }
}

</mosaic_0001>

<bundles_post_ra>
// kernel: adapter_bert_forward.1
= control target key start
LH: loop header
LB: loop body
LE: loop exit
PB: predicated region body
PF: predicated region fallthrough
CT: control target
= control target key end

     0   :  { %s2346_s18 = smov 0   ;;  %s2676_s0 = inlined_call_operand.vmem [shape: f32[16,32], index: 0, kind: input, shape index: {}]   ;;  %s2677_s1 = inlined_call_operand.vmem [shape: f32[2,8], index: 1, kind: input, shape index: {}]   ;;  %s2678_s2 = inlined_call_operand.vmem [shape: f32[2,32], index: 2, kind: input, shape index: {}]   ;;  %s2679_s3 = inlined_call_operand.vmem [shape: f32[2,16,128], index: 3, kind: input, shape index: {}]   ;;  %s2680_s4 = inlined_call_operand.vmem [shape: bf16[2,256,128], index: 4, kind: input, shape index: {}]   ;;  %s2681_s5 = inlined_call_operand.vmem [shape: f32[16,32], index: 5, kind: output, shape index: {}]  }
   0x1 LB: > { %s2352_s19 = sadd.s32 4294967295, %s2298_s18   ;;  %p1913_p0 = scmp.ge.s32.totalorder %s2298_s18, 1  ;;  %s2298_s18 = sphi %s2346_s18, %s15_s18  }
   0x2   : > { %p192_p1 = scmp.lt.s32.totalorder %s2298_s18, 3 }
   0x4   : > { %p193_p2 = pnand %p1913_p0, %p192_p1 }
   0x5   : > { %p220_p3 = scmp.lt.s32.totalorder (!%p193_p2), %s2352_s19, 1  ;;  %p1918_p4 = scmp.ne.s32.totalorder (!%p193_p2), %s2352_s19, 0 }
   0x6   : > { %196 = sbr.rel (%p193_p2) target bundleno = 3685 (0xe65), region = 40 }
   0xb   : > { %s221_s20 = scalar_select %p220_p3, %s2352_s19, 1 }
   0xc   : > { %234 = sbr.rel (%p1918_p4) target bundleno = 331 (0x14b), region = 44 }
   0xd   : > { %s1978_s21 = sshll.u32 %s221_s20, 4  ;;  %s1979_s22 = sshll.u32 %s221_s20, 7 }
   0xe   : > { %s2361_s25 = scalar_lea.vmem %s2679_s3, %s1978_s21  ;;  %s2366_s28 = scalar_lea.vmem %s2680_s4, %s1979_s22 }
  0x11   : > { %v235_v0 = vld [vmem:[%s2676_s0] sm:$0xff]  ;;  %vm239_vm0 = vcmask 261120   ;;  %v236_v1 = vld [vmem:[%s2676_s0 + $0x8] sm:$0xff] }
  0x12   : > { %v240_v2 = vsel %vm239_vm0, %v235_v0, 0.0  ;;  %v243_v3 = vsel %vm239_vm0, %v236_v1, 0.0  ;;  %v1919_v21 = vld [vmem:[%s2678_s2] ss:$0 sm:$0xff]  ;;  %v1920_v23 = vld [vmem:[%s2678_s2 + $0x1] ss:$0 sm:$0xff] }
  0x13   : > { %241 = vadd.xlane.f32.xlu0 %v240_v2 }
  0x17   : > { %244 = vadd.xlane.f32.xlu0 %v243_v3 }
  0x9c   : > { %v242_v4 = vpop.xlane.xlu0 %241 }
  0x9d   : > { %v247_v5 = vmul.f32 0.03125, %v242_v4 }
  0x9f   : > { %v249_v6 = vsub.f32 %v235_v0, %v247_v5 }
  0xa0   : > { %v245_v7 = vpop.xlane.xlu0 %244 }
  0xa1   : > { %v248_v8 = vmul.f32 0.03125, %v245_v7  ;;  %v251_v9 = vmul.f32 %v249_v6, %v249_v6 }
  0xa3   : > { %v250_v10 = vsub.f32 %v236_v1, %v248_v8  ;;  %v253_v11 = vsel %vm239_vm0, %v251_v9, 0.0 }
  0xa4   : > { %254 = vadd.xlane.f32.xlu1 %v253_v11 }
  0xa5   : > { %v252_v12 = vmul.f32 %v250_v10, %v250_v10 }
  0xa7   : > { %v256_v13 = vsel %vm239_vm0, %v252_v12, 0.0 }
  0xa8   : > { %257 = vadd.xlane.f32.xlu1 %v256_v13 }
 0x12d   : > { %v255_v14 = vpop.xlane.xlu1 %254 }
 0x12e   : > { %v259_v15 = vmul.f32 0.03125, %v255_v14 }
 0x130   : > { %v261_v16 = vadd.f32 1e-12, %v259_v15 }
 0x131   : > { %v258_v17 = vpop.xlane.xlu1 %257 }
 0x132   : > { %2220 = vrsqrt.f32 %v261_v16  ;;  %v260_v18 = vmul.f32 0.03125, %v258_v17 }
 0x134   : > { %v262_v19 = vadd.f32 1e-12, %v260_v18 }
 0x136   : > { %2222 = vrsqrt.f32 %v262_v19 }
 0x13f   : > { %v2221_v20 = vpop.eup %2220 }
 0x140   : > { %v265_v22 = vmul.f32 %v2221_v20, %v249_v6 }
 0x142   : > { %v271_v24 = vmul.f32 %v1919_v21, %v265_v22 }
 0x143   : > { %v2223_v25 = vpop.eup %2222 }
 0x144   : > { %v277_v26 = vadd.f32 %v1920_v23, %v271_v24  ;;  %v266_v27 = vmul.f32 %v2223_v25, %v250_v10 }
 0x146   : > { %279 = vst.msk [vmem:[#allocation2] sm:$0xff] %vm239_vm0, %v277_v26  ;;  %v272_v28 = vmul.f32 %v1919_v21, %v266_v27 }
 0x148   : > { %v278_v29 = vadd.f32 %v1920_v23, %v272_v28 }
 0x14a   : > { %280 = vst.msk [vmem:[#allocation2 + $0x8] sm:$0xff] %vm239_vm0, %v278_v29 }
 0x14b PF: > { %v2224_v30 = vld [vmem:[%s2366_s28 + $0x8] sm:$0xff]   ;;  %v2300_v31 = vmov 0.0   ;;  %v2225_v32 = vld [vmem:[%s2366_s28] sm:$0xff]   ;;  %vm2301_vm1 = vmmov 0   ;;  %vm305_vm2 = vcmask 261120   ;;  %s2302_s12 = smov 120  }
 0x14c   : > { %2036 = vmatprep.subr.bf16.mxu0 %v2300_v31  ;;  %2044 = vmatprep.subr.bf16.mxu1 %v2300_v31  ;;  %v1921_v36 = vld [vmem:[%s2361_s25] ss:$0 sm:$0xff]  ;;  %s2303_s13 = smov 96   ;;  %s2304_s14 = smov 80   ;;  %vm359_vm3 = vcmask 64512   ;;  %vm423_vm4 = vcmask 1043456  }
 0x14d   : > { %2037 = vmatpush3.bf16.msra.mxu0 %v2224_v30  ;;  %2040 = vmatprep.mubr.msk.bf16.mxu0 %vm2301_vm1, %v2300_v31  ;;  %v2393_v33 = vld [vmem:[#allocation2] sm:$0xff]  ;;  %s2305_s15 = smov 88   ;;  %s2306_s16 = smov 72   ;;  %vm582_vm5 = vcmask 130112   ;;  %vm698_vm6 = vcmask 195712   ;;  %vm814_vm7 = vcmask 261312  }
 0x14e   : > { %2038 = vmatprep.subr.bf16.mxu0 %v2300_v31  ;;  %2046 = vmatprep.mubr.msk.bf16.mxu1 %vm2301_vm1, %v2300_v31  ;;  %s2307_s17 = smov 112   ;;  %s2308_s20 = smov 104   ;;  %v1925_v3 = vld [vmem:[%s2677_s1] ss:$0 sm:$0xff]  ;;  %v1934_v28 = vld [vmem:[%s2677_s1 + $0x1] ss:$0 sm:$0xff] }
 0x14f   : > { %s2309_s26 = smov 56   ;;  %s2310_s27 = smov 64   ;;  %vm1435_vm8 = vcmask 130048   ;;  %vm1639_vm9 = vcmask 523264  }
 0x150   : > { %s2311_s29 = smov 48   ;;  %s2312_s30 = smov 40  }
 0x151   : > { %v2395_v34 = vld [vmem:[#allocation2 + $0x8] sm:$0xff]  ;;  %2039 = vmatpush3.bf16.msra.mxu0 %v2225_v32  ;;  %s2313_s6 = smov 8   ;;  %s2314_s7 = smov 16  }
 0x152   : > { %v287_v35 = vpack.c.bf16 %v2395_v34, %v2393_v33  ;;  %2050 = vmatprep.subr.bf16.mxu0 %v2300_v31  ;;  %s2315_s8 = smov 24   ;;  %p1975_p5 = scmp.ne.s32.totalorder %s2352_s19, 1 }
 0x154   : > { %2041 = vmatmul.mubr.msk.bf16.vlgmr.msra.gmra.mxu0 %vm305_vm2, %v287_v35 }
 0x155   : > { %2052 = vmatprep.mubr.msk.bf16.mxu0 %vm2301_vm1, %v2300_v31 }
 0x214   : > { %v343_v37 = vpop.f32.mrf.mxu0 }
 0x215   : > { %v344_v38 = vadd.f32 %v1921_v36, %v343_v37 }
 0x216   : > { %v2042_v39 = vpop.f32.mrf.mxu0 }
 0x217   : > { %v2407_v40 = vpack.c.bf16 %v344_v38, %v344_v38 }
 0x218   : > { %v346_v41 = vpop.f32.mrf.mxu0 }
 0x219   : > { %468 = vrot.lane.b32.xlu1 %v2407_v40, %s2302_s12  ;;  %357 = vrot.lane.b32.xlu0 %v2407_v40, %s2303_s13  ;;  %v347_v43 = vadd.f32 %v1921_v36, %v346_v41 }
 0x21a   : > { %v2043_v42 = vpop.f32.mrf.mxu0 }
 0x21b   : > { %v2415_v44 = vpack.c.bf16 %v347_v43, %v347_v43 }
 0x21d   : > { %586 = vrot.lane.b32.xlu1 %v2407_v40, %s2304_s14  ;;  %470 = vrot.lane.b32.xlu0 %v2407_v40, %s2305_s15 }
 0x221   : > { %702 = vrot.lane.b32.xlu1 %v2407_v40, %s2306_s16  ;;  %584 = vrot.lane.b32.xlu0 %v2407_v40, %s2307_s17 }
 0x225   : > { %700 = vrot.lane.b32.xlu0 %v2407_v40, %s2308_s20  ;;  %823 = vrot.lane.b32.xlu1 %v2415_v44, %s2303_s13 }
 0x229   : > { %934 = vrot.lane.b32.xlu0 %v2415_v44, %s2305_s15  ;;  %932 = vrot.lane.b32.xlu1 %v2415_v44, %s2302_s12 }
 0x22d   : > { %1049 = vrot.lane.b32.xlu0 %v2415_v44, %s2304_s14  ;;  %1047 = vrot.lane.b32.xlu1 %v2415_v44, %s2307_s17 }
 0x231   : > { %1164 = vrot.lane.b32.xlu0 %v2415_v44, %s2306_s16  ;;  %1162 = vrot.lane.b32.xlu1 %v2415_v44, %s2308_s20 }
 0x28b   : > { %v358_v45 = vpop.permute.xlu0 %357  ;;  %v469_v48 = vpop.permute.xlu1 %468 }
 0x28c   : > { %v364_v46 = vsel %vm359_vm3, %v358_v45, 0 }
 0x28d   : > { %2045 = vmatpush3.bf16.xpose.msra.mxu1 %v364_v46 }
 0x28e   : > { %2056 = vmatprep.subr.bf16.mxu1 %v2300_v31 }
 0x28f   : > { %v471_v47 = vpop.permute.xlu0 %470  ;;  %v587_v50 = vpop.permute.xlu1 %586 }
 0x290   : > { %v476_v49 = vsel %vm359_vm3, %v471_v47, 0  ;;  %v592_v51 = vsel %vm359_vm3, %v587_v50, 0 }
 0x293   : > { %v703_v52 = vpop.permute.xlu1 %702  ;;  %v585_v53 = vpop.permute.xlu0 %584 }
 0x294   : > { %2047 = vmatmul.mubr.msk.bf16.vlgmr.msra.gmra.mxu1 %vm359_vm3, %v2407_v40  ;;  %v708_v54 = vsel %vm359_vm3, %v703_v52, 0 }
 0x295   : > { %2057 = vmatpush3.bf16.xpose.msra.mxu1 %v476_v49  ;;  %2058 = vmatprep.mubr.msk.bf16.mxu1 %vm2301_vm1, %v2300_v31 }
 0x296   : > { %2068 = vmatprep.subr.bf16.mxu1 %v2300_v31 }
 0x297   : > { %v824_v55 = vpop.permute.xlu1 %823  ;;  %v701_v56 = vpop.permute.xlu0 %700 }
 0x298   : > { %v829_v57 = vsel %vm359_vm3, %v824_v55, 0 }
 0x29b   : > { %v935_v58 = vpop.permute.xlu0 %934  ;;  %v933_v61 = vpop.permute.xlu1 %932 }
 0x29c   : > { %2059 = vmatmul.mubr.msk.bf16.vlgmr.msra.gmra.mxu1 %vm359_vm3, %v469_v48  ;;  %v940_v59 = vsel %vm359_vm3, %v935_v58, 0 }
 0x29d   : > { %2069 = vmatpush3.bf16.xpose.msra.mxu1 %v592_v51  ;;  %2070 = vmatprep.mubr.msk.bf16.mxu1 %vm2301_vm1, %v2300_v31 }
 0x29e   : > { %2080 = vmatprep.subr.bf16.mxu1 %v2300_v31 }
 0x29f   : > { %v1050_v60 = vpop.permute.xlu0 %1049  ;;  %v1048_v0 = vpop.permute.xlu1 %1047 }
 0x2a0   : > { %v1055_v62 = vsel %vm359_vm3, %v1050_v60, 0 }
 0x2a3   : > { %v1165_v63 = vpop.permute.xlu0 %1164  ;;  %v1163_v2 = vpop.permute.xlu1 %1162 }
 0x2a4   : > { %2071 = vmatmul.mubr.msk.bf16.vlgmr.msra.gmra.mxu1 %vm359_vm3, %v585_v53  ;;  %v1170_v1 = vsel %vm359_vm3, %v1165_v63, 0 }
 0x2a5   : > { %2081 = vmatpush3.bf16.xpose.msra.mxu1 %v708_v54  ;;  %2082 = vmatprep.mubr.msk.bf16.mxu1 %vm2301_vm1, %v2300_v31 }
 0x2a6   : > { %2092 = vmatprep.subr.bf16.mxu1 %v2300_v31 }
 0x2ac   : > { %2083 = vmatmul.mubr.msk.bf16.vlgmr.msra.gmra.mxu1 %vm359_vm3, %v701_v56 }
 0x2ad   : > { %2093 = vmatpush3.bf16.xpose.msra.mxu1 %v829_v57  ;;  %2094 = vmatprep.mubr.msk.bf16.mxu1 %vm2301_vm1, %v2300_v31 }
 0x2ae   : > { %2104 = vmatprep.subr.bf16.mxu1 %v2300_v31 }
 0x2b4   : > { %2095 = vmatmul.mubr.msk.bf16.vlgmr.msra.gmra.mxu1 %vm359_vm3, %v2415_v44 }
 0x2b5   : > { %2105 = vmatpush3.bf16.xpose.msra.mxu1 %v940_v59  ;;  %2106 = vmatprep.mubr.msk.bf16.mxu1 %vm2301_vm1, %v2300_v31 }
 0x2b6   : > { %2116 = vmatprep.subr.bf16.mxu1 %v2300_v31 }
 0x2bc   : > { %2107 = vmatmul.mubr.msk.bf16.vlgmr.msra.gmra.mxu1 %vm359_vm3, %v933_v61 }
 0x2bd   : > { %2117 = vmatpush3.bf16.xpose.msra.mxu1 %v1055_v62  ;;  %2118 = vmatprep.mubr.msk.bf16.mxu1 %vm2301_vm1, %v2300_v31 }
 0x2be   : > { %2128 = vmatprep.subr.bf16.mxu1 %v2300_v31 }
 0x2c4   : > { %2119 = vmatmul.mubr.msk.bf16.vlgmr.msra.gmra.mxu1 %vm359_vm3, %v1048_v0 }
 0x2c5   : > { %2129 = vmatpush3.bf16.xpose.msra.mxu1 %v1170_v1  ;;  %2130 = vmatprep.mubr.msk.bf16.mxu1 %vm2301_vm1, %v2300_v31 }
 0x2c6   : > { %2140 = vmatprep.subr.bf16.mxu1 %v2300_v31 }
 0x2cc   : > { %2131 = vmatmul.mubr.msk.bf16.vlgmr.msra.gmra.mxu1 %vm359_vm3, %v1163_v2 }
 0x2cd   : > { %2144 = vmatprep.mubr.msk.bf16.mxu1 %vm2301_vm1, %v2300_v31 }
 0x354   : > { %v400_v4 = vpop.f32.mrf.mxu1 }
 0x355   : > { %v401_v5 = vadd.f32 %v1925_v3, %v400_v4 }
 0x356   : > { %v2048_v6 = vpop.f32.mrf.mxu1 }
 0x357   : > { %v406_v7 = vsel %vm359_vm3, %v401_v5, -inf }
 0x358   : > { %v403_v8 = vpop.f32.mrf.mxu1  ;;  %407 = vmax.xlane.f32.xlu0 %v406_v7 }
 0x35a   : > { %v2049_v9 = vpop.f32.mrf.mxu1 }
 0x35c   : > { %v512_v10 = vpop.f32.mrf.mxu1 }
 0x35d   : > { %v513_v11 = vadd.f32 %v1925_v3, %v512_v10 }
 0x35e   : > { %v2060_v12 = vpop.f32.mrf.mxu1 }
 0x35f   : > { %v518_v13 = vsel %vm359_vm3, %v513_v11, -inf }
 0x360   : > { %v515_v14 = vpop.f32.mrf.mxu1  ;;  %519 = vmax.xlane.f32.xlu1 %v518_v13 }
 0x362   : > { %v2061_v15 = vpop.f32.mrf.mxu1 }
 0x364   : > { %v628_v16 = vpop.f32.mrf.mxu1 }
 0x365   : > { %v629_v17 = vadd.f32 %v1925_v3, %v628_v16 }
 0x366   : > { %v2072_v18 = vpop.f32.mrf.mxu1 }
 0x367   : > { %v634_v19 = vsel %vm359_vm3, %v629_v17, -inf }
 0x368   : > { %v631_v20 = vpop.f32.mrf.mxu1  ;;  %635 = vmax.xlane.f32.xlu0 %v634_v19 }
 0x36a   : > { %v2073_v21 = vpop.f32.mrf.mxu1 }
 0x36c   : > { %v744_v22 = vpop.f32.mrf.mxu1 }
 0x36d   : > { %v2473_v23 = vadd.f32 %v1925_v3, %v744_v22 }
 0x36e   : > { %v2084_v24 = vpop.f32.mrf.mxu1 }
 0x36f   : > { %v750_v25 = vsel %vm359_vm3, %v2473_v23, -inf }
 0x370   : > { %v747_v26 = vpop.f32.mrf.mxu1  ;;  %751 = vmax.xlane.f32.xlu0 %v750_v25 }
 0x372   : > { %v2085_v27 = vpop.f32.mrf.mxu1 }
 0x374   : > { %v865_v29 = vpop.f32.mrf.mxu1 }
 0x375   : > { %v2480_v30 = vadd.f32 %v1934_v28, %v865_v29 }
 0x376   : > { %v2096_v32 = vpop.f32.mrf.mxu1 }
 0x377   : > { %v871_v35 = vsel %vm359_vm3, %v2480_v30, -inf }
 0x378   : > { %872 = vmax.xlane.f32.xlu1 %v871_v35  ;;  %v868_v36 = vpop.f32.mrf.mxu1 }
 0x37a   : > { %v2097_v37 = vpop.f32.mrf.mxu1 }
 0x37c   : > { %v976_v38 = vpop.f32.mrf.mxu1 }
 0x37d   : > { %v2484_v39 = vadd.f32 %v1934_v28, %v976_v38 }
 0x37e   : > { %v2108_v41 = vpop.f32.mrf.mxu1 }
 0x37f   : > { %v982_v42 = vsel %vm359_vm3, %v2484_v39, -inf }
 0x380   : > { %983 = vmax.xlane.f32.xlu0 %v982_v42  ;;  %v979_v43 = vpop.f32.mrf.mxu1 }
 0x382   : > { %v2109_v45 = vpop.f32.mrf.mxu1 }
 0x384   : > { %v1091_v46 = vpop.f32.mrf.mxu1 }
 0x385   : > { %v1092_v47 = vadd.f32 %v1934_v28, %v1091_v46 }
 0x386   : > { %v2120_v48 = vpop.f32.mrf.mxu1 }
 0x387   : > { %v1097_v49 = vsel %vm359_vm3, %v1092_v47, -inf }
 0x388   : > { %1098 = vmax.xlane.f32.xlu1 %v1097_v49  ;;  %v1094_v50 = vpop.f32.mrf.mxu1 }
 0x38a   : > { %v2121_v51 = vpop.f32.mrf.mxu1 }
 0x38c   : > { %v1206_v52 = vpop.f32.mrf.mxu1 }
 0x38d   : > { %v2493_v56 = vadd.f32 %v1934_v28, %v1206_v52 }
 0x38e   : > { %v2132_v53 = vpop.f32.mrf.mxu1 }
 0x38f   : > { %v1212_v57 = vsel %vm359_vm3, %v2493_v56, -inf }
 0x390   : > { %v1209_v54 = vpop.f32.mrf.mxu1 }
 0x392   : > { %v2133_v55 = vpop.f32.mrf.mxu1 }
 0x396   : > { %530 = vrot.lane.b32.xlu0 %v2407_v40, %s2309_s26 }
 0x399   : > { %418 = vrot.lane.b32.xlu1 %v2407_v40, %s2310_s27 }
 0x3b5   : > { %1213 = vmax.xlane.f32.xlu0 %v1212_v57 }
 0x3e1   : > { %v408_v58 = vpop.xlane.xlu0 %407 }
 0x3e2   : > { %v409_v59 = vsub.f32 %v401_v5, %v408_v58 }
 0x3e4   : > { %v410_v60 = vmul.f32 1.442695, %v409_v59 }
 0x3e6   : > { %2240 = vpow2.f32 %v410_v60 }
 0x3e9   : > { %v520_v61 = vpop.xlane.xlu1 %519 }
 0x3ea   : > { %v521_v62 = vsub.f32 %v513_v11, %v520_v61 }
 0x3ec   : > { %v522_v63 = vmul.f32 1.442695, %v521_v62 }
 0x3ee   : > { %2242 = vpow2.f32 %v522_v63 }
 0x3f1   : > { %v636_v0 = vpop.xlane.xlu0 %635 }
 0x3f2   : > { %v637_v1 = vsub.f32 %v629_v17, %v636_v0 }
 0x3f3   : > { %v2497_v2 = vpop.eup %2240 }
 0x3f4   : > { %v638_v3 = vmul.f32 1.442695, %v637_v1  ;;  %v412_v4 = vsel %vm359_vm3, %v2497_v2, 0.0 }
 0x3f5   : > { %413 = vadd.xlane.f32.xlu1 %v412_v4 }
 0x3f6   : > { %2244 = vpow2.f32 %v638_v3 }
 0x3f9   : > { %v752_v12 = vpop.xlane.xlu0 %751 }
 0x3fa   : > { %v753_v14 = vsub.f32 %v2473_v23, %v752_v12 }
 0x3fb   : > { %v2501_v6 = vpop.eup %2242 }
 0x3fc   : > { %v524_v5 = vsel %vm359_vm3, %v2501_v6, 0.0  ;;  %v754_v15 = vmul.f32 1.442695, %v753_v14 }
 0x3fd   : > { %525 = vadd.xlane.f32.xlu0 %v524_v5 }
 0x3fe   : > { %2246 = vpow2.f32 %v754_v15 }
 0x401   : > { %v873_v9 = vpop.xlane.xlu1 %872 }
 0x402   : > { %v874_v16 = vsub.f32 %v2480_v30, %v873_v9 }
 0x403   : > { %v2505_v7 = vpop.eup %2244 }
 0x404   : > { %v640_v8 = vsel %vm359_vm3, %v2505_v7, 0.0  ;;  %v875_v19 = vmul.f32 1.442695, %v874_v16 }
 0x405   : > { %641 = vadd.xlane.f32.xlu1 %v640_v8 }
 0x406   : > { %2248 = vpow2.f32 %v875_v19 }
 0x409   : > { %v984_v17 = vpop.xlane.xlu0 %983 }
 0x40a   : > { %v985_v18 = vsub.f32 %v2484_v39, %v984_v17 }
 0x40c   : > { %v986_v21 = vmul.f32 1.442695, %v985_v18 }
 0x40d   : > { %v531_v30 = vpop.permute.xlu0 %530 }
 0x40e   : > { %2250 = vpow2.f32 %v986_v21 }
 0x411   : > { %v1099_v10 = vpop.xlane.xlu1 %1098 }
 0x412   : > { %v1100_v20 = vsub.f32 %v1092_v47, %v1099_v10  ;;  %v536_v47 = vsel %vm423_vm4, %v531_v30, 0 }
 0x413   : > { %646 = vrot.lane.b32.xlu0 %v2407_v40, %s2311_s29 }
 0x414   : > { %v1101_v22 = vmul.f32 1.442695, %v1100_v20 }
 0x415   : > { %v419_v11 = vpop.permute.xlu1 %418 }
 0x416   : > { %v425_v13 = vsel %vm423_vm4, %v419_v11, 0  ;;  %762 = vrot.lane.b32.xlu1 %v2407_v40, %s2312_s30  ;;  %2252 = vpow2.f32 %v1101_v22  ;;  %v2247_v40 = vpop.eup %2246 }
 0x417   : > { %2051 = vmatpush3.bf16.msra.mxu0 %v425_v13  ;;  %v756_v24 = vsel %vm359_vm3, %v2247_v40, 0.0  ;;  %v2519_v25 = vpop.eup %2248 }
 0x418   : > { %2062 = vmatprep.subr.bf16.mxu0 %v2300_v31  ;;  %v877_v26 = vsel %vm359_vm3, %v2519_v25, 0.0 }
 0x41b   : > { %v2521_v23 = vpop.eup %2250 }
 0x41c   : > { %v988_v28 = vsel %vm359_vm3, %v2521_v23, 0.0 }
 0x423   : > { %v2525_v27 = vpop.eup %2252 }
 0x424   : > { %v1103_v29 = vsel %vm359_vm3, %v2525_v27, 0.0 }
 0x432   : > { %757 = vadd.xlane.f32.xlu0 %v756_v24 }
 0x436   : > { %878 = vadd.xlane.f32.xlu0 %v877_v26 }
 0x43a   : > { %989 = vadd.xlane.f32.xlu1 %v988_v28  ;;  %1104 = vadd.xlane.f32.xlu0 %v1103_v29 }
 0x43e   : > { %v1214_v32 = vpop.xlane.xlu0 %1213 }
 0x43f   : > { %v1215_v35 = vsub.f32 %v2493_v56, %v1214_v32 }
 0x441   : > { %v1216_v36 = vmul.f32 1.442695, %v1215_v35 }
 0x443   : > { %2254 = vpow2.f32 %v1216_v36 }
 0x44b   : > { %994 = vrot.lane.b32.xlu1 %v2415_v44, %s2309_s26 }
 0x44f   : > { %1109 = vrot.lane.b32.xlu1 %v2415_v44, %s2311_s29 }
 0x450   : > { %v2536_v37 = vpop.eup %2254 }
 0x451   : > { %v1218_v38 = vsel %vm359_vm3, %v2536_v37, 0.0 }
 0x452   : > { %1219 = vadd.xlane.f32.xlu0 %v1218_v38 }
 0x453   : > { %1224 = vrot.lane.b32.xlu1 %v2415_v44, %s2312_s30 }
 0x468   : > { %883 = vrot.lane.b32.xlu0 %v2415_v44, %s2310_s27 }
 0x47e   : > { %v414_v39 = vpop.xlane.xlu1 %413 }
 0x47f   : > { %2256 = vrcp.f32 %v414_v39 }
 0x486   : > { %v526_v41 = vpop.xlane.xlu0 %525 }
 0x487   : > { %2258 = vrcp.f32 %v526_v41 }
 0x48a   : > { %v647_v49 = vpop.permute.xlu0 %646 }
 0x48b   : > { %v652_v51 = vsel %vm423_vm4, %v647_v49, 0  ;;  %v2227_v49 = vld [vmem:[%s2366_s28 + $0x10] sm:$0xff]  }
 0x48c   : > { %v2257_v42 = vpop.eup %2256 }
 0x48d   : > { %v416_v43 = vmul.f32 %v2257_v42, %v2497_v2 }
 0x48e   : > { %v642_v45 = vpop.xlane.xlu1 %641 }
 0x48f   : > { %2260 = vrcp.f32 %v642_v45  ;;  %v417_v46 = vpack.c.bf16 %v416_v43, %v416_v43 }
 0x491   : > { %2053 = vmatmul.mubr.msk.bf16.vlgmr.msra.gmra.mxu0 %vm359_vm3, %v417_v46 }
 0x492   : > { %2063 = vmatpush3.bf16.msra.mxu0 %v536_v47  ;;  %2064 = vmatprep.mubr.msk.bf16.mxu0 %vm2301_vm1, %v2300_v31  ;;  %v763_v54 = vpop.permute.xlu1 %762 }
 0x493   : > { %2074 = vmatprep.subr.bf16.mxu0 %v2300_v31  ;;  %v768_v56 = vsel %vm423_vm4, %v763_v54, 0 }
 0x494   : > { %v2259_v44 = vpop.eup %2258 }
 0x495   : > { %v528_v48 = vmul.f32 %v2259_v44, %v2501_v6  ;;  %v2226_v44 = vld [vmem:[%s2366_s28 + $0x18] sm:$0xff]  }
 0x496   : > { %2141 = vmatpush3.bf16.msra.mxu1 %v2226_v44 }
 0x497   : > { %v529_v50 = vpack.c.bf16 %v528_v48, %v528_v48  ;;  %2142 = vmatprep.subr.bf16.mxu1 %v2300_v31 }
 0x499   : > { %2065 = vmatmul.mubr.msk.bf16.vlgmr.msra.gmra.mxu0 %vm359_vm3, %v529_v50 }
 0x49a   : > { %2075 = vmatpush3.bf16.msra.mxu0 %v652_v51  ;;  %2076 = vmatprep.mubr.msk.bf16.mxu0 %vm2301_vm1, %v2300_v31 }
 0x49b   : > { %2086 = vmatprep.subr.bf16.mxu0 %v2300_v31  ;;  %2143 = vmatpush3.bf16.msra.mxu1 %v2227_v49 }
 0x49c   : > { %v2261_v52 = vpop.eup %2260  ;;  %2156 = vmatprep.subr.bf16.mxu1 %v2300_v31 }
 0x49d   : > { %v644_v53 = vmul.f32 %v2261_v52, %v2505_v7 }
 0x49f   : > { %v645_v55 = vpack.c.bf16 %v644_v53, %v644_v53 }
 0x4a1   : > { %2077 = vmatmul.mubr.msk.bf16.vlgmr.msra.gmra.mxu0 %vm359_vm3, %v645_v55 }
 0x4a2   : > { %2087 = vmatpush3.bf16.msra.mxu0 %v768_v56  ;;  %2088 = vmatprep.mubr.msk.bf16.mxu0 %vm2301_vm1, %v2300_v31 }
 0x4a3   : > { %2098 = vmatprep.subr.bf16.mxu0 %v2300_v31 }
 0x4bb   : > { %v758_v57 = vpop.xlane.xlu0 %757 }
 0x4bc   : > { %2262 = vrcp.f32 %v758_v57 }
 0x4bf   : > { %v879_v60 = vpop.xlane.xlu0 %878 }
 0x4c0   : > { %2264 = vrcp.f32 %v879_v60 }
 0x4c3   : > { %v990_v62 = vpop.xlane.xlu1 %989  ;;  %v1105_v63 = vpop.xlane.xlu0 %1104 }
 0x4c4   : > { %2266 = vrcp.f32 %v990_v62 }
 0x4c5   : > { %2268 = vrcp.f32 %v1105_v63 }
 0x4c7   : > { %v995_v6 = vpop.permute.xlu1 %994 }
 0x4c8   : > { %v1000_v8 = vsel %vm423_vm4, %v995_v6, 0 }
 0x4c9   : > { %v2263_v58 = vpop.eup %2262 }
 0x4ca   : > { %v760_v59 = vmul.f32 %v2263_v58, %v2247_v40 }
 0x4cb   : > { %v1110_v10 = vpop.permute.xlu1 %1109 }
 0x4cc   : > { %v761_v61 = vpack.c.bf16 %v760_v59, %v760_v59  ;;  %v1115_v13 = vsel %vm423_vm4, %v1110_v10, 0 }
 0x4cd   : > { %v2265_v0 = vpop.eup %2264 }
 0x4ce   : > { %2089 = vmatmul.mubr.msk.bf16.vlgmr.msra.gmra.mxu0 %vm359_vm3, %v761_v61  ;;  %v881_v2 = vmul.f32 %v2265_v0, %v2519_v25 }
 0x4cf   : > { %2100 = vmatprep.mubr.msk.bf16.mxu0 %vm2301_vm1, %v2300_v31  ;;  %v1225_v15 = vpop.permute.xlu1 %1224 }
 0x4d0   : > { %v882_v5 = vpack.c.bf16 %v881_v2, %v881_v2  ;;  %v1230_v18 = vsel %vm423_vm4, %v1225_v15, 0 }
 0x4d1   : > { %v2267_v7 = vpop.eup %2266 }
 0x4d2   : > { %v992_v9 = vmul.f32 %v2267_v7, %v2521_v23  ;;  %v2269_v12 = vpop.eup %2268 }
 0x4d3   : > { %v1107_v14 = vmul.f32 %v2269_v12, %v2525_v27 }
 0x4d4   : > { %v993_v11 = vpack.c.bf16 %v992_v9, %v992_v9 }
 0x4d5   : > { %v1108_v16 = vpack.c.bf16 %v1107_v14, %v1107_v14  ;;  %v1947_v14 = vld [vmem:[%s2361_s25 + $0x2] ss:$0 sm:$0xff] }
 0x4db   : > { %v1220_v1 = vpop.xlane.xlu0 %1219 }
 0x4dc   : > { %2270 = vrcp.f32 %v1220_v1 }
 0x4df   : > { %v884_v3 = vpop.permute.xlu0 %883 }
 0x4e0   : > { %v889_v4 = vsel %vm423_vm4, %v884_v3, 0  ;;  %v2228_v3 = vld [vmem:[%s2366_s28 + $0x28] sm:$0xff]  }
 0x4e1   : > { %2099 = vmatpush3.bf16.msra.mxu0 %v889_v4  ;;  %v2229_v4 = vld [vmem:[%s2366_s28 + $0x20] sm:$0xff]  }
 0x4e2   : > { %2110 = vmatprep.subr.bf16.mxu0 %v2300_v31 }
 0x4e4   : > { %2101 = vmatmul.mubr.msk.bf16.vlgmr.msra.gmra.mxu0 %vm359_vm3, %v882_v5  ;;  %v1943_v5 = vld [vmem:[%s2361_s25 + $0x1] ss:$0 sm:$0xff] }
 0x4e5   : > { %2111 = vmatpush3.bf16.msra.mxu0 %v1000_v8  ;;  %2112 = vmatprep.mubr.msk.bf16.mxu0 %vm2301_vm1, %v2300_v31 }
 0x4e6   : > { %2122 = vmatprep.subr.bf16.mxu0 %v2300_v31 }
 0x4e9   : > { %v2271_v17 = vpop.eup %2270 }
 0x4ea   : > { %v1222_v19 = vmul.f32 %v2271_v17, %v2536_v37 }
 0x4ec   : > { %2113 = vmatmul.mubr.msk.bf16.vlgmr.msra.gmra.mxu0 %vm359_vm3, %v993_v11  ;;  %v1223_v20 = vpack.c.bf16 %v1222_v19, %v1222_v19 }
 0x4ed   : > { %2123 = vmatpush3.bf16.msra.mxu0 %v1115_v13  ;;  %2124 = vmatprep.mubr.msk.bf16.mxu0 %vm2301_vm1, %v2300_v31  ;;  %v2230_v13 = vld [vmem:[%s2366_s28 + $0x30] sm:$0xff]  }
 0x4ee   : > { %2134 = vmatprep.subr.bf16.mxu0 %v2300_v31 }
 0x4f4   : > { %2125 = vmatmul.mubr.msk.bf16.vlgmr.msra.gmra.mxu0 %vm359_vm3, %v1108_v16 }
 0x4f5   : > { %2135 = vmatpush3.bf16.msra.mxu0 %v1230_v18  ;;  %2136 = vmatprep.mubr.msk.bf16.mxu0 %vm2301_vm1, %v2300_v31 }
 0x4f6   : > { %2148 = vmatprep.subr.bf16.mxu0 %v2300_v31 }
 0x4fc   : > { %2137 = vmatmul.mubr.msk.bf16.vlgmr.msra.gmra.mxu0 %vm359_vm3, %v1223_v20 }
 0x4fd   : > { %2152 = vmatprep.mubr.msk.bf16.mxu0 %vm2301_vm1, %v2300_v31  ;;  %2149 = vmatpush3.bf16.msra.mxu0 %v2228_v3 }
 0x4fe   : > { %2150 = vmatprep.subr.bf16.mxu0 %v2300_v31 }
 0x501   : > { %2151 = vmatpush3.bf16.msra.mxu0 %v2229_v4 }
 0x502   : > { %2162 = vmatprep.subr.bf16.mxu0 %v2300_v31 }
 0x551   : > { %v461_v21 = vpop.f32.mrf.mxu0 }
 0x552   : > { %467 = vst.msk [vmem:[#allocation3] sm:$0xff] %vm359_vm3, %v461_v21 }
 0x553   : > { %v2054_v22 = vpop.f32.mrf.mxu0 }
 0x555   : > { %v464_v40 = vpop.f32.mrf.mxu0 }
 0x557   : > { %v2055_v24 = vpop.f32.mrf.mxu0 }
 0x559   : > { %v572_v25 = vpop.f32.mrf.mxu0 }
 0x55a   : > { %579 = vrot.lane.b32.xlu1 %v572_v25, %s2313_s6 }
 0x55b   : > { %v2066_v23 = vpop.f32.mrf.mxu0 }
 0x55d   : > { %v575_v26 = vpop.f32.mrf.mxu0 }
 0x55f   : > { %v2067_v27 = vpop.f32.mrf.mxu0 }
 0x561   : > { %v688_v28 = vpop.f32.mrf.mxu0 }
 0x562   : > { %695 = vrot.lane.b32.xlu0 %v688_v28, %s2314_s7 }
 0x563   : > { %v2078_v29 = vpop.f32.mrf.mxu0 }
 0x565   : > { %v691_v30 = vpop.f32.mrf.mxu0 }
 0x567   : > { %v2079_v32 = vpop.f32.mrf.mxu0 }
 0x568   : > { %v1951_v32 = vld [vmem:[%s2361_s25 + $0x3] ss:$0 sm:$0xff] }
 0x58e   : > { %v804_v35 = vpop.f32.mrf.mxu0 }
 0x58f   : > { %811 = vrot.lane.b32.xlu0 %v804_v35, %s2315_s8 }
 0x590   : > { %v2090_v36 = vpop.f32.mrf.mxu0 }
 0x592   : > { %v807_v37 = vpop.f32.mrf.mxu0 }
 0x594   : > { %v2091_v38 = vpop.f32.mrf.mxu0 }
 0x5a4   : > { %v925_v39 = vpop.f32.mrf.mxu0 }
 0x5a5   : > { %931 = vst.msk [vmem:[#allocation3 + $0x8] sm:$0xff] %vm359_vm3, %v925_v39 }
 0x5a6   : > { %v2102_v41 = vpop.f32.mrf.mxu0 }
 0x5a8   : > { %v928_v42 = vpop.f32.mrf.mxu0 }
 0x5aa   : > { %v2103_v43 = vpop.f32.mrf.mxu0 }
 0x5ac   : > { %v1036_v45 = vpop.f32.mrf.mxu0 }
 0x5ad   : > { %1043 = vrot.lane.b32.xlu1 %v1036_v45, %s2313_s6 }
 0x5ae   : > { %v2114_v46 = vpop.f32.mrf.mxu0 }
 0x5b0   : > { %v1039_v47 = vpop.f32.mrf.mxu0 }
 0x5b2   : > { %v2115_v48 = vpop.f32.mrf.mxu0 }
 0x5b4   : > { %v1151_v50 = vpop.f32.mrf.mxu0 }
 0x5b5   : > { %1158 = vrot.lane.b32.xlu1 %v1151_v50, %s2314_s7 }
 0x5b6   : > { %v2126_v51 = vpop.f32.mrf.mxu0 }
 0x5b8   : > { %v1154_v52 = vpop.f32.mrf.mxu0 }
 0x5ba   : > { %v2127_v53 = vpop.f32.mrf.mxu0 }
 0x5bc   : > { %v1266_v54 = vpop.f32.mrf.mxu0 }
 0x5bd   : > { %1273 = vrot.lane.b32.xlu1 %v1266_v54, %s2315_s8 }
 0x5be   : > { %v2138_v55 = vpop.f32.mrf.mxu0 }
 0x5c0   : > { %v1269_v56 = vpop.f32.mrf.mxu0 }
 0x5c2   : > { %v2139_v57 = vpop.f32.mrf.mxu0 }
 0x5c3   : > { %v2231_v57 = vld [vmem:[%s2366_s28 + $0x40] sm:$0xff]  }
 0x5cc   : > { %v580_v58 = vpop.permute.xlu1 %579 }
 0x5cd   : > { %583 = vst.msk [vmem:[#allocation3] sm:$0xff] %vm582_vm5, %v580_v58 }
 0x5d4   : > { %v696_v59 = vpop.permute.xlu0 %695 }
 0x5d5   : > { %699 = vst.msk [vmem:[#allocation3] sm:$0xff] %vm698_vm6, %v696_v59 }
 0x601   : > { %v812_v60 = vpop.permute.xlu0 %811 }
 0x602   : > { %815 = vst.msk [vmem:[#allocation3] sm:$0xff] %vm814_vm7, %v812_v60 }
 0x609   : > { %v1277_v0 = vld [vmem:[#allocation3] sm:$0xff] }
 0x61f   : > { %v1044_v61 = vpop.permute.xlu1 %1043 }
 0x620   : > { %1046 = vst.msk [vmem:[#allocation3 + $0x8] sm:$0xff] %vm582_vm5, %v1044_v61 }
 0x627   : > { %v1159_v62 = vpop.permute.xlu1 %1158 }
 0x628   : > { %1161 = vst.msk [vmem:[#allocation3 + $0x8] sm:$0xff] %vm698_vm6, %v1159_v62 }
 0x62f   : > { %v1274_v63 = vpop.permute.xlu1 %1273 }
 0x630   : > { %1276 = vst.msk [vmem:[#allocation3 + $0x8] sm:$0xff] %vm814_vm7, %v1274_v63 }
 0x637   : > { %v1278_v1 = vld [vmem:[#allocation3 + $0x8] sm:$0xff] }
 0x638   : > { %v1283_v2 = vpack.c.bf16 %v1278_v1, %v1277_v0 }
 0x63a   : > { %2145 = vmatmul.mubr.msk.bf16.vlgmr.msra.gmra.mxu1 %vm305_vm2, %v1283_v2  ;;  %v1954_v2 = vld [vmem:[%s2361_s25 + $0x4] ss:$0 sm:$0xff] }
 0x63b   : > { %2158 = vmatprep.mubr.msk.bf16.mxu1 %vm2301_vm1, %v2300_v31  ;;  %2157 = vmatpush3.bf16.msra.mxu1 %v2230_v13  ;;  %v2235_v13 = vld [vmem:[%s2366_s28 + $0x50] sm:$0xff]  }
 0x63c   : > { %2170 = vmatprep.subr.bf16.mxu1 %v2300_v31 }
 0x6fa   : > { %v1338_v6 = vpop.f32.mrf.mxu1 }
 0x6fb   : > { %v1339_v9 = vadd.f32 %v1943_v5, %v1338_v6 }
 0x6fc   : > { %v2146_v7 = vpop.f32.mrf.mxu1 }
 0x6fe   : > { %v1341_v8 = vpop.f32.mrf.mxu1 }
 0x6ff   : > { %v1342_v10 = vadd.f32 %v1943_v5, %v1341_v8  ;;  %v1955_v5 = vld [vmem:[%s2361_s25 + $0x5] ss:$0 sm:$0xff] }
 0x700   : > { %v2147_v11 = vpop.f32.mrf.mxu1 }
 0x701   : > { %v1349_v12 = vpack.c.bf16 %v1342_v10, %v1339_v9  ;;  %v2233_v11 = vld [vmem:[%s2366_s28 + $0x60] sm:$0xff]  }
 0x703   : > { %2153 = vmatmul.mubr.msk.bf16.vlgmr.msra.gmra.mxu0 %vm305_vm2, %v1349_v12  ;;  %v2234_v12 = vld [vmem:[%s2366_s28 + $0x58] sm:$0xff]  }
 0x704   : > { %2166 = vmatprep.mubr.msk.bf16.mxu0 %vm2301_vm1, %v2300_v31  ;;  %2163 = vmatpush3.bf16.msra.mxu0 %v2231_v57 }
 0x705   : > { %2164 = vmatprep.subr.bf16.mxu0 %v2300_v31 }
 0x7c3   : > { %v1404_v15 = vpop.f32.mrf.mxu0 }
 0x7c4   : > { %v1405_v16 = vadd.f32 %v1947_v14, %v1404_v15  ;;  %v1956_v15 = vld [vmem:[%s2361_s25 + $0x6] ss:$0 sm:$0xff] }
 0x7c5   : > { %v2154_v17 = vpop.f32.mrf.mxu0 }
 0x7c6   : > { %v1413_v18 = vmul.f32 0.70710677, %v1405_v16  ;;  %v1411_v23 = vmul.f32 0.5, %v1405_v16 }
 0x7c7   : > { %v1407_v19 = vpop.f32.mrf.mxu0 }
 0x7c8   : > { %2272 = verf.f32 %v1413_v18  ;;  %v1408_v20 = vadd.f32 %v1947_v14, %v1407_v19  ;;  %v2236_v14 = vld [vmem:[%s2366_s28 + $0x48] sm:$0xff]  }
 0x7c9   : > { %v2155_v21 = vpop.f32.mrf.mxu0 }
 0x7ca   : > { %v1414_v22 = vmul.f32 0.70710677, %v1408_v20  ;;  %v1412_v26 = vmul.f32 0.5, %v1408_v20 }
 0x7cc   : > { %2274 = verf.f32 %v1414_v22 }
 0x7d5   : > { %v2273_v40 = vpop.eup %2272 }
 0x7d6   : > { %v1417_v24 = vadd.f32 1.0, %v2273_v40 }
 0x7d8   : > { %v1419_v28 = vmul.f32 %v1417_v24, %v1411_v23 }
 0x7d9   : > { %v2275_v25 = vpop.eup %2274 }
 0x7da   : > { %v1418_v27 = vadd.f32 1.0, %v2275_v25 }
 0x7dc   : > { %v1420_v29 = vmul.f32 %v1418_v27, %v1412_v26 }
 0x7de   : > { %v1423_v30 = vpack.c.bf16 %v1420_v29, %v1419_v28 }
 0x7e0   : > { %2159 = vmatmul.mubr.msk.bf16.vlgmr.msra.gmra.mxu1 %vm1435_vm8, %v1423_v30 }
 0x7e1   : > { %2178 = vmatprep.mubr.msk.bf16.mxu1 %vm2301_vm1, %v2300_v31  ;;  %2171 = vmatpush3.bf16.msra.mxu1 %v2233_v11 }
 0x7e2   : > { %2172 = vmatprep.subr.bf16.mxu1 %v2300_v31 }
 0x7e5   : > { %2173 = vmatpush3.bf16.msra.mxu1 %v2234_v12 }
 0x7e6   : > { %2174 = vmatprep.subr.bf16.mxu1 %v2300_v31 }
 0x7e9   : > { %2175 = vmatpush3.bf16.msra.mxu1 %v2235_v13 }
 0x7ea   : > { %2176 = vmatprep.subr.bf16.mxu1 %v2300_v31 }
 0x7ed   : > { %2177 = vmatpush3.bf16.msra.mxu1 %v2236_v14 }
 0x8a0   : > { %v1473_v35 = vpop.f32.mrf.mxu1 }
 0x8a1   : > { %v1474_v36 = vadd.f32 %v1951_v32, %v1473_v35  ;;  %v2237_v35 = vld [vmem:[%s2366_s28 + $0x70] sm:$0xff]  }
 0x8a2   : > { %v2160_v37 = vpop.f32.mrf.mxu1 }
 0x8a3   : > { %v1480_v38 = vadd.f32 %v1474_v36, %v1339_v9  ;;  %v2238_v36 = vld [vmem:[%s2366_s28 + $0x68] sm:$0xff]  }
 0x8a4   : > { %v1476_v39 = vpop.f32.mrf.mxu1 }
 0x8a5   : > { %v1477_v41 = vadd.f32 %v1951_v32, %v1476_v39  ;;  %v1482_v42 = vadd.f32 %v1480_v38, %v2393_v33  ;;  %v1960_v38 = vld [vmem:[%s2361_s25 + $0x7] ss:$0 sm:$0xff] }
 0x8a6   : > { %v2161_v43 = vpop.f32.mrf.mxu1 }
 0x8a7   : > { %v1481_v45 = vadd.f32 %v1477_v41, %v1342_v10  ;;  %v1486_v46 = vsel %vm305_vm2, %v1482_v42, 0.0 }
 0x8a8   : > { %1487 = vadd.xlane.f32.xlu0 %v1486_v46 }
 0x8a9   : > { %v1483_v47 = vadd.f32 %v1481_v45, %v2395_v34  ;;  %v2232_v34 = vld [vmem:[%s2366_s28 + $0x38] sm:$0xff]  }
 0x8aa   : > { %2165 = vmatpush3.bf16.msra.mxu0 %v2232_v34 }
 0x8ab   : > { %v1489_v44 = vsel %vm305_vm2, %v1483_v47, 0.0  ;;  %2182 = vmatprep.subr.bf16.mxu0 %v2300_v31 }
 0x8ac   : > { %1490 = vadd.xlane.f32.xlu1 %v1489_v44  ;;  %v1966_v44 = vld [vmem:[%s2361_s25 + $0x8] ss:$0 sm:$0xff] }
 0x931   : > { %v1488_v48 = vpop.xlane.xlu0 %1487 }
 0x932   : > { %v1493_v49 = vmul.f32 0.03125, %v1488_v48 }
 0x934   : > { %v1495_v50 = vsub.f32 %v1482_v42, %v1493_v49 }
 0x935   : > { %v1491_v51 = vpop.xlane.xlu1 %1490 }
 0x936   : > { %v1494_v52 = vmul.f32 0.03125, %v1491_v51  ;;  %v1497_v53 = vmul.f32 %v1495_v50, %v1495_v50 }
 0x938   : > { %v1496_v54 = vsub.f32 %v1483_v47, %v1494_v52  ;;  %v1499_v33 = vsel %vm305_vm2, %v1497_v53, 0.0  ;;  %v2239_v47 = vld [vmem:[%s2366_s28 + $0x78] sm:$0xff]  }
 0x939   : > { %1500 = vadd.xlane.f32.xlu0 %v1499_v33 }
 0x93a   : > { %v1498_v55 = vmul.f32 %v1496_v54, %v1496_v54 }
 0x93c   : > { %v1502_v56 = vsel %vm305_vm2, %v1498_v55, 0.0 }
 0x93d   : > { %1503 = vadd.xlane.f32.xlu0 %v1502_v56 }
 0x9c2   : > { %v1501_v58 = vpop.xlane.xlu0 %1500 }
 0x9c3   : > { %v1505_v59 = vmul.f32 0.03125, %v1501_v58 }
 0x9c5   : > { %v1507_v60 = vadd.f32 1e-12, %v1505_v59 }
 0x9c6   : > { %v1504_v61 = vpop.xlane.xlu0 %1503 }
 0x9c7   : > { %2276 = vrsqrt.f32 %v1507_v60  ;;  %v1506_v62 = vmul.f32 0.03125, %v1504_v61 }
 0x9c9   : > { %v1508_v63 = vadd.f32 1e-12, %v1506_v62  ;;  %v1970_v62 = vld [vmem:[%s2361_s25 + $0x9] ss:$0 sm:$0xff] }
 0x9cb   : > { %2278 = vrsqrt.f32 %v1508_v63 }
 0x9d4   : > { %v2277_v0 = vpop.eup %2276 }
 0x9d5   : > { %v1511_v1 = vmul.f32 %v2277_v0, %v1495_v50 }
 0x9d7   : > { %v1517_v6 = vmul.f32 %v1954_v2, %v1511_v1 }
 0x9d8   : > { %v2279_v3 = vpop.eup %2278 }
 0x9d9   : > { %v1512_v4 = vmul.f32 %v2279_v3, %v1496_v54  ;;  %v2625_v8 = vadd.f32 %v1955_v5, %v1517_v6 }
 0x9db   : > { %v1518_v7 = vmul.f32 %v1954_v2, %v1512_v4 }
 0x9dd   : > { %v2627_v9 = vadd.f32 %v1955_v5, %v1518_v7 }
 0x9df   : > { %v1529_v10 = vpack.c.bf16 %v2627_v9, %v2625_v8 }
 0x9e1   : > { %2167 = vmatmul.mubr.msk.bf16.vlgmr.msra.gmra.mxu0 %vm305_vm2, %v1529_v10 }
 0x9e2   : > { %2186 = vmatprep.mubr.msk.bf16.mxu0 %vm2301_vm1, %v2300_v31  ;;  %2183 = vmatpush3.bf16.msra.mxu0 %v2237_v35 }
 0x9e3   : > { %2184 = vmatprep.subr.bf16.mxu0 %v2300_v31 }
 0x9e6   : > { %2185 = vmatpush3.bf16.msra.mxu0 %v2238_v36 }
 0x9e7   : > { %2190 = vmatprep.subr.bf16.mxu0 %v2300_v31 }
 0xaa1   : > { %v1584_v16 = vpop.f32.mrf.mxu0 }
 0xaa2   : > { %v1585_v17 = vadd.f32 %v1956_v15, %v1584_v16 }
 0xaa3   : > { %v2168_v18 = vpop.f32.mrf.mxu0 }
 0xaa4   : > { %v1593_v19 = vmul.f32 0.70710677, %v1585_v17  ;;  %v1591_v26 = vmul.f32 0.5, %v1585_v17 }
 0xaa5   : > { %v1587_v20 = vpop.f32.mrf.mxu0 }
 0xaa6   : > { %2280 = verf.f32 %v1593_v19  ;;  %v1588_v21 = vadd.f32 %v1956_v15, %v1587_v20 }
 0xaa7   : > { %v2169_v22 = vpop.f32.mrf.mxu0 }
 0xaa8   : > { %v1594_v40 = vmul.f32 0.70710677, %v1588_v21  ;;  %v1592_v27 = vmul.f32 0.5, %v1588_v21 }
 0xaaa   : > { %2282 = verf.f32 %v1594_v40 }
 0xab3   : > { %v2281_v24 = vpop.eup %2280 }
 0xab4   : > { %v1597_v25 = vadd.f32 1.0, %v2281_v24 }
 0xab6   : > { %v1599_v29 = vmul.f32 %v1597_v25, %v1591_v26 }
 0xab7   : > { %v2283_v23 = vpop.eup %2282 }
 0xab8   : > { %v1598_v28 = vadd.f32 1.0, %v2283_v23 }
 0xaba   : > { %v1600_v30 = vmul.f32 %v1598_v28, %v1592_v27  ;;  %v1973_v27 = vld [vmem:[%s2361_s25 + $0xa] ss:$0 sm:$0xff] }
 0xabc   : > { %v1609_v32 = vpack.c.bf16 %v1600_v30, %v1599_v29  ;;  %v1974_v29 = vld [vmem:[%s2361_s25 + $0xb] ss:$0 sm:$0xff] }
 0xabe   : > { %2179 = vmatmul.mubr.msk.bf16.vlgmr.msra.gmra.mxu1 %vm1639_vm9, %v1609_v32 }
 0xb7e   : > { %v1677_v37 = vpop.f32.mrf.mxu1 }
 0xb7f   : > { %v1678_v42 = vadd.f32 %v1960_v38, %v1677_v37 }
 0xb80   : > { %v2180_v39 = vpop.f32.mrf.mxu1 }
 0xb82   : > { %v1680_v41 = vpop.f32.mrf.mxu1 }
 0xb83   : > { %v1681_v43 = vadd.f32 %v1960_v38, %v1680_v41 }
 0xb84   : > { %v2181_v45 = vpop.f32.mrf.mxu1 }
 0xb85   : > { %v1688_v46 = vpack.c.bf16 %v1681_v43, %v1678_v42 }
 0xb87   : > { %2187 = vmatmul.mubr.msk.bf16.vlgmr.msra.gmra.mxu0 %vm305_vm2, %v1688_v46 }
 0xb88   : > { %2192 = vmatprep.mubr.msk.bf16.mxu0 %vm2301_vm1, %v2300_v31  ;;  %2191 = vmatpush3.bf16.msra.mxu0 %v2239_v47 }
 0xc47   : > { %v1743_v48 = vpop.f32.mrf.mxu0 }
 0xc48   : > { %v1744_v49 = vadd.f32 %v1966_v44, %v1743_v48 }
 0xc49   : > { %v2188_v50 = vpop.f32.mrf.mxu0 }
 0xc4a   : > { %v1752_v51 = vmul.f32 0.70710677, %v1744_v49  ;;  %v1750_v34 = vmul.f32 0.5, %v1744_v49 }
 0xc4b   : > { %v1746_v52 = vpop.f32.mrf.mxu0 }
 0xc4c   : > { %2284 = verf.f32 %v1752_v51  ;;  %v1747_v53 = vadd.f32 %v1966_v44, %v1746_v52 }
 0xc4d   : > { %v2189_v54 = vpop.f32.mrf.mxu0 }
 0xc4e   : > { %v1753_v33 = vmul.f32 0.70710677, %v1747_v53  ;;  %v1751_v58 = vmul.f32 0.5, %v1747_v53 }
 0xc50   : > { %2286 = verf.f32 %v1753_v33 }
 0xc59   : > { %v2285_v55 = vpop.eup %2284 }
 0xc5a   : > { %v1756_v56 = vadd.f32 1.0, %v2285_v55 }
 0xc5c   : > { %v1758_v59 = vmul.f32 %v1756_v56, %v1750_v34 }
 0xc5d   : > { %v2287_v57 = vpop.eup %2286 }
 0xc5e   : > { %v1757_v31 = vadd.f32 1.0, %v2287_v57 }
 0xc60   : > { %v1759_v60 = vmul.f32 %v1757_v31, %v1751_v58 }
 0xc62   : > { %v1762_v61 = vpack.c.bf16 %v1759_v60, %v1758_v59 }
 0xc64   : > { %2193 = vmatmul.mubr.msk.bf16.vlgmr.msra.gmra.mxu0 %vm1435_vm8, %v1762_v61 }
 0xd24   : > { %v1811_v63 = vpop.f32.mrf.mxu0 }
 0xd25   : > { %v1812_v0 = vadd.f32 %v1970_v62, %v1811_v63 }
 0xd26   : > { %v2194_v1 = vpop.f32.mrf.mxu0 }
 0xd27   : > { %v1818_v2 = vadd.f32 %v1812_v0, %v1678_v42 }
 0xd28   : > { %v1814_v3 = vpop.f32.mrf.mxu0 }
 0xd29   : > { %v1815_v4 = vadd.f32 %v1970_v62, %v1814_v3  ;;  %v1820_v6 = vadd.f32 %v1818_v2, %v2625_v8 }
 0xd2a   : > { %v2195_v5 = vpop.f32.mrf.mxu0 }
 0xd2b   : > { %v1819_v7 = vadd.f32 %v1815_v4, %v1681_v43  ;;  %v1824_v10 = vsel %vm305_vm2, %v1820_v6, 0.0 }
 0xd2c   : > { %1825 = vadd.xlane.f32.xlu1 %v1824_v10 }
 0xd2d   : > { %v1821_v11 = vadd.f32 %v1819_v7, %v2627_v9 }
 0xd2f   : > { %v1827_v12 = vsel %vm305_vm2, %v1821_v11, 0.0 }
 0xd30   : > { %1828 = vadd.xlane.f32.xlu0 %v1827_v12 }
 0xdb5   : > { %v1826_v13 = vpop.xlane.xlu1 %1825 }
 0xdb6   : > { %v1830_v14 = vmul.f32 0.03125, %v1826_v13 }
 0xdb8   : > { %v1832_v15 = vsub.f32 %v1820_v6, %v1830_v14 }
 0xdb9   : > { %v1829_v16 = vpop.xlane.xlu0 %1828 }
 0xdba   : > { %v1831_v17 = vmul.f32 0.03125, %v1829_v16  ;;  %v1834_v18 = vmul.f32 %v1832_v15, %v1832_v15 }
 0xdbc   : > { %v1833_v19 = vsub.f32 %v1821_v11, %v1831_v17  ;;  %v1836_v8 = vsel %vm305_vm2, %v1834_v18, 0.0 }
 0xdbd   : > { %1837 = vadd.xlane.f32.xlu1 %v1836_v8 }
 0xdbe   : > { %v1835_v20 = vmul.f32 %v1833_v19, %v1833_v19 }
 0xdc0   : > { %v1839_v21 = vsel %vm305_vm2, %v1835_v20, 0.0 }
 0xdc1   : > { %1840 = vadd.xlane.f32.xlu0 %v1839_v21 }
 0xe46   : > { %v1838_v9 = vpop.xlane.xlu1 %1837 }
 0xe47   : > { %v1842_v22 = vmul.f32 0.03125, %v1838_v9 }
 0xe49   : > { %v1844_v40 = vadd.f32 1e-12, %v1842_v22 }
 0xe4a   : > { %v1841_v24 = vpop.xlane.xlu0 %1840 }
 0xe4b   : > { %2288 = vrsqrt.f32 %v1844_v40  ;;  %v1843_v25 = vmul.f32 0.03125, %v1841_v24 }
 0xe4d   : > { %v1845_v23 = vadd.f32 1e-12, %v1843_v25 }
 0xe4f   : > { %2290 = vrsqrt.f32 %v1845_v23 }
 0xe58   : > { %v2289_v26 = vpop.eup %2288 }
 0xe59   : > { %v1848_v28 = vmul.f32 %v2289_v26, %v1832_v15 }
 0xe5b   : > { %v1854_v30 = vmul.f32 %v1973_v27, %v1848_v28 }
 0xe5c   : > { %v2291_v32 = vpop.eup %2290 }
 0xe5d   : > { %v1860_v35 = vadd.f32 %v1974_v29, %v1854_v30  ;;  %v1849_v36 = vmul.f32 %v2291_v32, %v1833_v19 }
 0xe5f   : > { %1862 = vst.msk [vmem:[#allocation2] sm:$0xff] %vm305_vm2, %v1860_v35  ;;  %v1855_v37 = vmul.f32 %v1973_v27, %v1849_v36  ;;  %1867 = sbr.rel (%p1975_p5) target bundleno = 3685 (0xe65), region = 48 }
 0xe61   : > { %v1861_v38 = vadd.f32 %v1974_v29, %v1855_v37 }
 0xe63   : > { %1863 = vst.msk [vmem:[#allocation2 + $0x8] sm:$0xff] %vm305_vm2, %v1861_v38 }
 0xe64   : > { %1868 = vst.msk [vmem:[%s2681_s5] sm:$0xff] %vm305_vm2, %v1860_v35  ;;  %1869 = vst.msk [vmem:[%s2681_s5 + $0x8] sm:$0xff] %vm305_vm2, %v1861_v38 }
 0xe65 PF: > { %s15_s18 = sadd.s32 1, %s2298_s18  }
 0xe66   : > { %p12_p6 = scmp.ge.s32.totalorder %s15_s18, 4  }
 0xe68   :  { %14 = sbr.rel (!%p12_p6) target bundleno = 1 (0x1), region = 77 }

</bundles_post_ra>
